<compile_context>
chip_gen: v5e
topology: v5e:2x2
jax: 0.10.0
libtpu: 0.0.40
codegen_flags: <defaults>
</compile_context>

<pallas_src>
import math

import jax
import jax.numpy as jnp
from jax import lax
from jax.experimental import pallas as pl
from jax.experimental.pallas import tpu as pltpu


def _round_up(n, m):
    return ((n + m - 1) // m) * m


def flowhd_kernel(x_ref, wt_ref, bias_ref, c0_ref, cwn_ref, out_ref):
    # x_ref:   (C, tb, F)   channel-major batch tile (dense sublanes)
    # wt_ref:  (F, Dp)      Sinusoid projection (W transposed), D padded to 128
    # bias_ref:(1, Dp)      Sinusoid bias (zero in padded columns)
    # c0_ref:  (1, Dp)      precomputed 0.5 * C * sin(bias)
    # cwn_ref: (Dp, Kp)     pre-normalized, transposed, zero-padded class weights
    # out_ref: (tb, Kp)     cosine similarities (lane-dense output tile)
    C, tb, _ = x_ref.shape
    Dp = wt_ref.shape[1]

    wt = wt_ref[...]
    bias = jnp.broadcast_to(bias_ref[...], (tb, Dp))   # hoisted broadcast

    # Channel-unrolled projection + sin accumulation (C is small and static).
    acc = jnp.zeros((tb, Dp), jnp.float32)
    for c in range(C):
        p = jnp.dot(x_ref[c], wt, preferred_element_type=jnp.float32)  # (tb, Dp)
        acc = acc + jnp.sin(2.0 * p + bias)

    # sum_c cos(p_c + b) * sin(p_c) = 0.5 * sum_c sin(2 p_c + b) - 0.5*C*sin(b)
    hv = jnp.tanh(0.5 * acc - c0_ref[...])             # (tb, Dp), soft_quantize

    # Cosine similarity: class weights were normalized in the wrapper, so only
    # hv needs normalizing here (norm clamped at 1e-8, matching torch eps).
    sq = jnp.sum(hv * hv, axis=-1, keepdims=True)      # (tb, 1)
    inv = lax.rsqrt(jnp.maximum(sq, 1e-16))
    out_ref[...] = jnp.dot(hv * inv, cwn_ref[...],
                           preferred_element_type=jnp.float32).astype(out_ref.dtype)


def _auto_batch_tile(B, C, F, Dp, Kp, budget_bytes=12 << 20):
    """Largest power-of-two batch tile (<=1024) whose working set fits budget.

    Keeps double-buffered x/out tiles + resident weights + f32 intermediates
    under the default scoped-VMEM limit on every generation (16 MiB on v5e,
    32 MiB on v6e/v7x) so no extra vmem_limit_bytes flag is required.
    """
    fixed = 4 * 2 * (F * Dp + 2 * Dp + Dp * Kp)          # weights/consts (2 bufs)
    tb = 1024
    while tb > 8:
        per_tile = 4 * (2 * C * tb * F + 2 * tb * Kp + 3 * tb * Dp)
        if fixed + per_tile <= budget_bytes:
            break
        tb //= 2
    return max(8, min(tb, _round_up(B, 8)))


def flowhd_forward(x, w, bias, class_w, *, tb=None, use_bf16_matmul_inputs=False):
    """FlowHD forward.

    x: (B, C, F) f32; w: (D, F); bias: (1, D); class_w: (K, D)  ->  (B, K) f32.
    """
    x = jnp.asarray(x, jnp.float32)
    w = jnp.asarray(w, jnp.float32)
    bias = jnp.asarray(bias, jnp.float32).reshape(1, -1)
    class_w = jnp.asarray(class_w, jnp.float32)

    B, C, F = x.shape
    D = w.shape[0]
    K = class_w.shape[0]

    Dp = _round_up(D, 128)
    Kp = _round_up(K, 128)

    if tb is None:
        tb = _auto_batch_tile(B, C, F, Dp, Kp)
    tb = max(8, _round_up(tb, 8))
    Bp = _round_up(B, tb)
    n_steps = Bp // tb
    if n_steps > 1 and n_steps % 2:        # even grid -> both v7x TCs get work
        Bp += tb
        n_steps += 1

    # Layout plumbing done once in the wrapper (outside the kernel):
    #  * x -> channel-major (C, Bp, F) so each per-channel (tb, F) slab is
    #    sublane-dense inside the kernel.
    #  * w -> (F, Dp) so the contraction is lane-friendly; D zero-padded.
    #  * class weights pre-normalized (norm clamped at 1e-8), transposed and
    #    zero-padded to (Dp, Kp) -> lane-dense MXU output, output sliced later.
    x_t = jnp.zeros((C, Bp, F), jnp.float32).at[:, :B, :].set(
        jnp.transpose(x, (1, 0, 2)))
    wt = jnp.zeros((F, Dp), jnp.float32).at[:, :D].set(w.T)
    bias_p = jnp.zeros((1, Dp), jnp.float32).at[:, :D].set(bias)
    c0 = 0.5 * C * jnp.sin(bias_p)          # padded columns: sin(0) = 0

    cw_norm = jnp.maximum(
        jnp.sqrt(jnp.sum(class_w * class_w, axis=-1, keepdims=True)), 1e-8)
    cw_n = class_w / cw_norm
    cwn_t = jnp.zeros((Dp, Kp), jnp.float32).at[:D, :K].set(cw_n.T)

    if use_bf16_matmul_inputs:
        # Optional on v6e/v7x (bf16 MXU + bf16 VPU): halves HBM traffic for x.
        # Accumulation and the transcendental path remain f32.  Avoid on v5e.
        x_t = x_t.astype(jnp.bfloat16)
        wt = wt.astype(jnp.bfloat16)

    out = pl.pallas_call(
        flowhd_kernel,
        out_shape=jax.ShapeDtypeStruct((Bp, Kp), jnp.float32),
        grid=(n_steps,),
        in_specs=[
            pl.BlockSpec((C, tb, F), lambda i: (0, i, 0)),
            pl.BlockSpec((F, Dp), lambda i: (0, 0)),
            pl.BlockSpec((1, Dp), lambda i: (0, 0)),
            pl.BlockSpec((1, Dp), lambda i: (0, 0)),
            pl.BlockSpec((Dp, Kp), lambda i: (0, 0)),
        ],
        out_specs=pl.BlockSpec((tb, Kp), lambda i: (i, 0)),
        compiler_params=pltpu.CompilerParams(
            dimension_semantics=("parallel",),
        ),
    )(x_t, wt, bias_p, c0, cwn_t)

    return out[:B, :K]


def flowhd_reference(x, w, bias, class_w):
    """Pure-JAX reference with the channel roll implemented explicitly."""
    proj = jnp.einsum("bcf,df->bcd", x, w)
    enc = jnp.cos(proj + bias) * jnp.sin(proj)        # (B, C, D)
    B, C, D = enc.shape
    rolled = jnp.stack(
        [jnp.roll(enc[:, :, d], D - d - 1, axis=-1) for d in range(D)], axis=2
    )                                                 # (B, C, D)
    hv = jnp.tanh(jnp.sum(rolled, axis=1))            # (B, D)
    dots = hv @ class_w.T
    hv_mag = jnp.maximum(jnp.linalg.norm(hv, axis=-1, keepdims=True), 1e-8)
    cw_mag = jnp.maximum(jnp.linalg.norm(class_w, axis=-1)[None, :], 1e-8)
    return dots / (hv_mag * cw_mag)


if __name__ == "__main__":
    # Small, deterministic synthetic setup consistent with FLowHD.forward.
    B, C, F = 8, 4, 16          # batch, channels, features per channel
    D, K = 256, 10              # hypervector dimension, n_classes

    key = jax.random.PRNGKey(0)
    kx, kw, kb, kc = jax.random.split(key, 4)

    x = jax.random.normal(kx, (B, C, F), dtype=jnp.float32)
    # Sinusoid params: weight ~ N(0,1) (D, F); bias ~ U[0, 2*pi) (1, D)
    w = jax.random.normal(kw, (D, F), dtype=jnp.float32)
    bias = jax.random.uniform(kb, (1, D), dtype=jnp.float32, minval=0.0,
                              maxval=2.0 * math.pi)
    # Centroid weight (torchhd inits to zeros; random here for a meaningful
    # synthetic similarity -- this is not a checkpoint load).
    class_w = jax.random.normal(kc, (K, D), dtype=jnp.float32)

    out = flowhd_forward(x, w, bias, class_w)
    out = jax.block_until_ready(out)

    ref = flowhd_reference(x, w, bias, class_w)
    assert out.shape == (B, K)
    assert jnp.allclose(out, ref, atol=1e-4, rtol=1e-4), (
        "mismatch vs reference: max abs err = "
        f"{float(jnp.max(jnp.abs(out - ref)))}")

    print("KERNEL_OK")
</pallas_src>

<mosaic_0001>
module attributes {stable_mosaic.version = 11 : i64} {
  func.func @flowhd_kernel(%arg0: i32, %arg1: memref<4x8x16xf32, #tpu.memory_space<vmem>>, %arg2: memref<16x256xf32, #tpu.memory_space<vmem>>, %arg3: memref<1x256xf32, #tpu.memory_space<vmem>>, %arg4: memref<1x256xf32, #tpu.memory_space<vmem>>, %arg5: memref<256x128xf32, #tpu.memory_space<vmem>>, %arg6: memref<8x128xf32, #tpu.memory_space<vmem>>) attributes {dimension_semantics = [#tpu.dimension_semantics<parallel>], iteration_bounds = array<i64: 1>, scalar_prefetch = 0 : i64, scratch_operands = 0 : i64, tpu.core_type = #tpu.core_type<tc>, window_params = [{transform_indices = @transform_0, window_bounds = array<i64: 4, 8, 16>}, {pipeline_mode = #tpu.pipeline_mode<synchronous>, transform_indices = @transform_1, window_bounds = array<i64: 16, 256>}, {pipeline_mode = #tpu.pipeline_mode<synchronous>, transform_indices = @transform_2, window_bounds = array<i64: 1, 256>}, {pipeline_mode = #tpu.pipeline_mode<synchronous>, transform_indices = @transform_3, window_bounds = array<i64: 1, 256>}, {pipeline_mode = #tpu.pipeline_mode<synchronous>, transform_indices = @transform_4, window_bounds = array<i64: 256, 128>}, {transform_indices = @transform_5, window_bounds = array<i64: 8, 128>}]} {
    %c0 = arith.constant 0 : index
    %c0_0 = arith.constant 0 : index
    %0 = vector.load %arg2[%c0, %c0_0] : memref<16x256xf32, #tpu.memory_space<vmem>>, vector<16x256xf32>
    %c0_1 = arith.constant 0 : index
    %c0_2 = arith.constant 0 : index
    %1 = vector.load %arg3[%c0_1, %c0_2] : memref<1x256xf32, #tpu.memory_space<vmem>>, vector<1x256xf32>
    %2 = vector.shape_cast %1 : vector<1x256xf32> to vector<1x256xf32>
    %3 = vector.broadcast %2 : vector<1x256xf32> to vector<8x256xf32>
    %cst = arith.constant 0.000000e+00 : f32
    %4 = vector.broadcast %cst : f32 to vector<8x256xf32>
    %c0_3 = arith.constant 0 : index
    %c0_4 = arith.constant 0 : index
    %c0_5 = arith.constant 0 : index
    %5 = vector.load %arg1[%c0_3, %c0_4, %c0_5] : memref<4x8x16xf32, #tpu.memory_space<vmem>>, vector<1x8x16xf32>
    %6 = vector.shape_cast %5 : vector<1x8x16xf32> to vector<8x16xf32>
    %cst_6 = arith.constant dense<0.000000e+00> : vector<8x256xf32>
    %7 = tpu.matmul %6, %0, %cst_6 {dimension_numbers = #tpu.dot_dimension_numbers<[1], [0], [0], [1], [0, 0, 1, 1], [], []>} : vector<8x16xf32>, vector<16x256xf32>, vector<8x256xf32> -> vector<8x256xf32>
    %cst_7 = arith.constant 2.000000e+00 : f32
    %8 = vector.broadcast %cst_7 : f32 to vector<8x256xf32>
    %9 = arith.mulf %8, %7 : vector<8x256xf32>
    %10 = arith.addf %9, %3 : vector<8x256xf32>
    %11 = math.sin %10 : vector<8x256xf32>
    %12 = arith.addf %4, %11 : vector<8x256xf32>
    %c1 = arith.constant 1 : index
    %c0_8 = arith.constant 0 : index
    %c0_9 = arith.constant 0 : index
    %13 = vector.load %arg1[%c1, %c0_8, %c0_9] : memref<4x8x16xf32, #tpu.memory_space<vmem>>, vector<1x8x16xf32>
    %14 = vector.shape_cast %13 : vector<1x8x16xf32> to vector<8x16xf32>
    %cst_10 = arith.constant dense<0.000000e+00> : vector<8x256xf32>
    %15 = tpu.matmul %14, %0, %cst_10 {dimension_numbers = #tpu.dot_dimension_numbers<[1], [0], [0], [1], [0, 0, 1, 1], [], []>} : vector<8x16xf32>, vector<16x256xf32>, vector<8x256xf32> -> vector<8x256xf32>
    %cst_11 = arith.constant 2.000000e+00 : f32
    %16 = vector.broadcast %cst_11 : f32 to vector<8x256xf32>
    %17 = arith.mulf %16, %15 : vector<8x256xf32>
    %18 = arith.addf %17, %3 : vector<8x256xf32>
    %19 = math.sin %18 : vector<8x256xf32>
    %20 = arith.addf %12, %19 : vector<8x256xf32>
    %c2 = arith.constant 2 : index
    %c0_12 = arith.constant 0 : index
    %c0_13 = arith.constant 0 : index
    %21 = vector.load %arg1[%c2, %c0_12, %c0_13] : memref<4x8x16xf32, #tpu.memory_space<vmem>>, vector<1x8x16xf32>
    %22 = vector.shape_cast %21 : vector<1x8x16xf32> to vector<8x16xf32>
    %cst_14 = arith.constant dense<0.000000e+00> : vector<8x256xf32>
    %23 = tpu.matmul %22, %0, %cst_14 {dimension_numbers = #tpu.dot_dimension_numbers<[1], [0], [0], [1], [0, 0, 1, 1], [], []>} : vector<8x16xf32>, vector<16x256xf32>, vector<8x256xf32> -> vector<8x256xf32>
    %cst_15 = arith.constant 2.000000e+00 : f32
    %24 = vector.broadcast %cst_15 : f32 to vector<8x256xf32>
    %25 = arith.mulf %24, %23 : vector<8x256xf32>
    %26 = arith.addf %25, %3 : vector<8x256xf32>
    %27 = math.sin %26 : vector<8x256xf32>
    %28 = arith.addf %20, %27 : vector<8x256xf32>
    %c3 = arith.constant 3 : index
    %c0_16 = arith.constant 0 : index
    %c0_17 = arith.constant 0 : index
    %29 = vector.load %arg1[%c3, %c0_16, %c0_17] : memref<4x8x16xf32, #tpu.memory_space<vmem>>, vector<1x8x16xf32>
    %30 = vector.shape_cast %29 : vector<1x8x16xf32> to vector<8x16xf32>
    %cst_18 = arith.constant dense<0.000000e+00> : vector<8x256xf32>
    %31 = tpu.matmul %30, %0, %cst_18 {dimension_numbers = #tpu.dot_dimension_numbers<[1], [0], [0], [1], [0, 0, 1, 1], [], []>} : vector<8x16xf32>, vector<16x256xf32>, vector<8x256xf32> -> vector<8x256xf32>
    %cst_19 = arith.constant 2.000000e+00 : f32
    %32 = vector.broadcast %cst_19 : f32 to vector<8x256xf32>
    %33 = arith.mulf %32, %31 : vector<8x256xf32>
    %34 = arith.addf %33, %3 : vector<8x256xf32>
    %35 = math.sin %34 : vector<8x256xf32>
    %36 = arith.addf %28, %35 : vector<8x256xf32>
    %cst_20 = arith.constant 5.000000e-01 : f32
    %37 = vector.broadcast %cst_20 : f32 to vector<8x256xf32>
    %38 = arith.mulf %37, %36 : vector<8x256xf32>
    %c0_21 = arith.constant 0 : index
    %c0_22 = arith.constant 0 : index
    %39 = vector.load %arg4[%c0_21, %c0_22] : memref<1x256xf32, #tpu.memory_space<vmem>>, vector<1x256xf32>
    %40 = vector.broadcast %39 : vector<1x256xf32> to vector<8x256xf32>
    %41 = arith.subf %38, %40 : vector<8x256xf32>
    %42 = math.tanh %41 : vector<8x256xf32>
    %43 = arith.mulf %42, %42 : vector<8x256xf32>
    %cst_23 = arith.constant dense<0.000000e+00> : vector<8xf32>
    %44 = vector.multi_reduction <add>, %43, %cst_23 [1] : vector<8x256xf32> to vector<8xf32>
    %45 = vector.shape_cast %44 : vector<8xf32> to vector<8x1xf32>
    %cst_24 = arith.constant 1.000000e-16 : f32
    %46 = vector.broadcast %cst_24 : f32 to vector<8x1xf32>
    %47 = arith.maximumf %45, %46 : vector<8x1xf32>
    %48 = math.rsqrt %47 : vector<8x1xf32>
    %49 = vector.broadcast %48 : vector<8x1xf32> to vector<8x256xf32>
    %50 = arith.mulf %42, %49 : vector<8x256xf32>
    %c0_25 = arith.constant 0 : index
    %c0_26 = arith.constant 0 : index
    %51 = vector.load %arg5[%c0_25, %c0_26] : memref<256x128xf32, #tpu.memory_space<vmem>>, vector<256x128xf32>
    %cst_27 = arith.constant dense<0.000000e+00> : vector<8x128xf32>
    %52 = tpu.matmul %50, %51, %cst_27 {dimension_numbers = #tpu.dot_dimension_numbers<[1], [0], [0], [1], [0, 0, 1, 1], [], []>} : vector<8x256xf32>, vector<256x128xf32>, vector<8x128xf32> -> vector<8x128xf32>
    %c0_28 = arith.constant 0 : index
    %c0_29 = arith.constant 0 : index
    %53 = vector.load %arg6[%c0_28, %c0_29] : memref<8x128xf32, #tpu.memory_space<vmem>>, vector<8x128xf32>
    tpu.vector_store %arg6[%c0_28, %c0_29], %52 {strides = array<i32>} : memref<8x128xf32, #tpu.memory_space<vmem>>, vector<8x128xf32>,
    return
  }
  func.func @transform_0(%arg0: i32) -> (i32, i32, i32) {
    %c0_i32 = arith.constant 0 : i32
    %c0_i32_0 = arith.constant 0 : i32
    %c0_i32_1 = arith.constant 0 : i32
    return %c0_i32, %arg0, %c0_i32_0 : i32, i32, i32
  }
  func.func @transform_1(%arg0: i32) -> (i32, i32) {
    %c0_i32 = arith.constant 0 : i32
    %c0_i32_0 = arith.constant 0 : i32
    %c0_i32_1 = arith.constant 0 : i32
    return %c0_i32, %c0_i32_0 : i32, i32
  }
  func.func @transform_2(%arg0: i32) -> (i32, i32) {
    %c0_i32 = arith.constant 0 : i32
    %c0_i32_0 = arith.constant 0 : i32
    %c0_i32_1 = arith.constant 0 : i32
    return %c0_i32, %c0_i32_0 : i32, i32
  }
  func.func @transform_3(%arg0: i32) -> (i32, i32) {
    %c0_i32 = arith.constant 0 : i32
    %c0_i32_0 = arith.constant 0 : i32
    %c0_i32_1 = arith.constant 0 : i32
    return %c0_i32, %c0_i32_0 : i32, i32
  }
  func.func @transform_4(%arg0: i32) -> (i32, i32) {
    %c0_i32 = arith.constant 0 : i32
    %c0_i32_0 = arith.constant 0 : i32
    %c0_i32_1 = arith.constant 0 : i32
    return %c0_i32, %c0_i32_0 : i32, i32
  }
  func.func @transform_5(%arg0: i32) -> (i32, i32) {
    %c0_i32 = arith.constant 0 : i32
    %c0_i32_0 = arith.constant 0 : i32
    return %arg0, %c0_i32 : i32, i32
  }
}

</mosaic_0001>

<bundles_post_ra>
// kernel: tpu_custom_call.1
= control target key start
LH: loop header
LB: loop body
LE: loop exit
PB: predicated region body
PF: predicated region fallthrough
CT: control target
= control target key end

     0   :  { %10 = vsyncpa [#allocation3], 0  ;;  %s3213_s0 = inlined_call_operand.hbm [shape: f32[4,8,16], index: 0, kind: input, shape index: {}]   ;;  %s3214_s1 = inlined_call_operand.hbm [shape: f32[16,256], index: 1, kind: input, shape index: {}]   ;;  %s3215_s2 = inlined_call_operand.hbm [shape: f32[1,256], index: 2, kind: input, shape index: {}]   ;;  %s3216_s3 = inlined_call_operand.vmem [shape: f32[1,256], index: 3, kind: input, shape index: {}]   ;;  %s3217_s4 = inlined_call_operand.hbm [shape: f32[256,128], index: 4, kind: input, shape index: {}]   ;;  %s3218_s5 = inlined_call_operand.hbm [shape: f32[8,128], index: 5, kind: output, shape index: {}]  }
   0x1   :  { %11 = vsyncpa [#allocation6], 0 }
   0x2   :  { %12 = vsyncpa [#allocation9], 0  ;;  %s31_s20 = sshll.u32 %s3214_s1, 4  ;;  %s32_s20 = int_to_ptr.hbm [resolvable:$true] %s31_s20 }
   0x3   :  { %13 = vsyncpa [#allocation4], 0  ;;  %s1840_s21 = smov [#allocation5]   ;;  %s18_s25 = sshll.u32 %s3213_s0, 4  ;;  %s19_s25 = int_to_ptr.hbm [resolvable:$true] %s18_s25 }
   0x4   :  { %s33_s22 = sshll.u32 %s1840_s21, 4  ;;  %s1841_s26 = smov 256   ;;  %s34_s22 = int_to_ptr.vmem [resolvable:$true] %s33_s22 }
   0x5   :  { %s1842_s27 = smov 16   ;;  %s1843_s28 = smov [#allocation2]  }
   0x6   :  { %39 = dma.hbm_to_vmem [thread:$0]  %s32_s20, 512, %s34_s22, [#allocation6], %s1841_s26, %s1841_s26, %s1842_s27  }
   0x7   :  { %s20_s29 = sshll.u32 %s1843_s28, 4  ;;  %s1844_s30 = smov 128   ;;  %s21_s29 = int_to_ptr.vmem [resolvable:$true] %s20_s29 }
   0x8   :  { %s1845_s6 = smov 8   ;;  %s45_s8 = sshll.u32 %s3215_s2, 4  ;;  %s46_s8 = int_to_ptr.hbm [resolvable:$true] %s45_s8 }
   0x9   :  { %26 = dma.hbm_to_vmem [thread:$0]  %s19_s25, 512, %s21_s29, [#allocation3], %s1844_s30, %s1844_s30, %s1845_s6  }
   0xa   :  { %s1846_s9 = smov [#allocation7]   ;;  %s57_s12 = sshll.u32 %s3217_s4, 4  ;;  %s58_s12 = int_to_ptr.hbm [resolvable:$true] %s57_s12 }
   0xb   :  { %s47_s10 = sshll.u32 %s1846_s9, 4  ;;  %s1847_s13 = smov [#allocation8]   ;;  %s48_s10 = int_to_ptr.vmem [resolvable:$true] %s47_s10 }
   0xc   :  { %50 = dma.hbm_to_vmem [thread:$0]  %s46_s8, 32, %s48_s10, [#allocation6]  }
   0xd   :  { %s59_s14 = sshll.u32 %s1847_s13, 4  ;;  %s60_s14 = int_to_ptr.vmem [resolvable:$true] %s59_s14 }
   0xe   :  { %65 = dma.hbm_to_vmem [thread:$0]  %s58_s12, 4096, %s60_s14, [#allocation9], %s1844_s30, %s1844_s30, %s1845_s6  }
   0xf   :  { %1832 = dma.done.wait [#allocation3], 512  }
  0x10   :  { %1833 = vsyncadd [#allocation3], 4294966784 }
  0x11   :  { %1834 = dma.done.wait [#allocation6], 544  }
  0x12   :  { %1835 = vsyncadd [#allocation6], 4294966752 }
  0x13   :  { %1836 = dma.done.wait [#allocation9], 4096  }
  0x14   :  { %1837 = vsyncadd [#allocation9], 4294963200  ;;  %v84_v0 = vld [vmem:[#allocation5 + $0x10] sm:$0xff]  ;;  %v85_v1 = vld [vmem:[#allocation5 + $0x18] sm:$0xff]  ;;  %vm93_vm0 = vcmask 130048   ;;  %s1646_s18 = sshll.u32 %s3218_s5, 4  ;;  %s1647_s18 = int_to_ptr.hbm [resolvable:$true] %s1646_s18 }
  0x15   :  { %v82_v2 = vld [vmem:[#allocation5] sm:$0xff]  ;;  %111 = vmatpush.msra.mxu2 %v84_v0  ;;  %131 = vmatpush.msra.mxu3 %v85_v1  ;;  %v83_v3 = vld [vmem:[#allocation5 + $0x8] sm:$0xff]  ;;  %v815_v6 = vld [vmem:[#allocation2 + $0x10] sm:$0xff]  ;;  %v3237_v30 = vmov 683565275  }
  0x16   :  { %v92_v4 = vld [vmem:[#allocation2] sm:$0xff]  ;;  %v454_v5 = vld [vmem:[#allocation2 + $0x8] sm:$0xff]  ;;  %v1176_v7 = vld [vmem:[#allocation2 + $0x18] sm:$0xff]  ;;  %v3230_v32 = vmov 2475754826  }
  0x17   :  { %112 = vmatpush.msra.mxu2 %v82_v2  ;;  %132 = vmatpush.msra.mxu3 %v83_v3  ;;  %v86_v8 = vld [vmem:[#allocation7] sm:$0x3]  ;;  %v3224_v36 = vmov 2131351028   ;;  %v3222_v39 = vmov 2102212464  }
  0x18   :  { %1658 = vmatmul.msk.f32.vlgmr.msra.gmra.mxu2 %vm93_vm0, %v92_v4  ;;  %1659 = vmatmul.msk.f32.vlgmr.msra.gmra.mxu3 %vm93_vm0, %v92_v4  ;;  %v1906_v9 = vperm.slane %v86_v8, 0  ;;  %v1908_v13 = vperm.slane %v86_v8, 1  ;;  %v3228_v42 = vmov 920167782   ;;  %v3226_v45 = vmov 1326507024  }
  0x19   :  { %472 = vmatpush.msrb.mxu2 %v84_v0  ;;  %492 = vmatpush.msrb.mxu3 %v85_v1 }
  0x1b   :  { %473 = vmatpush.msrb.mxu2 %v82_v2  ;;  %493 = vmatpush.msrb.mxu3 %v83_v3 }
  0x1d   :  { %833 = vmatpush.msra.mxu2 %v84_v0  ;;  %853 = vmatpush.msra.mxu3 %v85_v1 }
  0x1f   :  { %834 = vmatpush.msra.mxu2 %v82_v2  ;;  %854 = vmatpush.msra.mxu3 %v83_v3 }
  0x20   :  { %1666 = vmatmul.msk.f32.vlgmr.msrb.gmra.mxu2 %vm93_vm0, %v454_v5  ;;  %1667 = vmatmul.msk.f32.vlgmr.msrb.gmra.mxu3 %vm93_vm0, %v454_v5 }
  0x21   :  { %1194 = vmatpush.msrb.mxu2 %v84_v0  ;;  %1214 = vmatpush.msrb.mxu3 %v85_v1 }
  0x23   :  { %1195 = vmatpush.msrb.mxu2 %v82_v2  ;;  %1215 = vmatpush.msrb.mxu3 %v83_v3 }
  0x28   :  { %1674 = vmatmul.msk.f32.vlgmr.msra.gmra.mxu2 %vm93_vm0, %v815_v6  ;;  %1675 = vmatmul.msk.f32.vlgmr.msra.gmra.mxu3 %vm93_vm0, %v815_v6 }
  0x30   :  { %1682 = vmatmul.msk.f32.vlgmr.msrb.gmra.mxu2 %vm93_vm0, %v1176_v7  ;;  %1683 = vmatmul.msk.f32.vlgmr.msrb.gmra.mxu3 %vm93_vm0, %v1176_v7 }
  0x9b   :  { %v114_v10 = vpop.f32.mrf.mxu2  ;;  %v134_v11 = vpop.f32.mrf.mxu3 }
  0x9c   :  { %v137_v12 = vmul.f32 2.0, %v114_v10  ;;  %v138_v14 = vmul.f32 2.0, %v134_v11 }
  0x9e   :  { %v1911_v15 = vadd.f32 %v137_v12, %v1906_v9  ;;  %v1915_v17 = vadd.f32 %v138_v14, %v1908_v13 }
  0xa0   :  { %3254 = vst [vmem:[#allocation15_spill] sm:$0xff] %v1911_v15  ;;  %v144_v16 = vand.u32 2139095040, %v1911_v15  ;;  %v141_v19 = vand.u32 2147483647, %v1911_v15  ;;  %v299_v21 = vand.u32 2139095040, %v1915_v17 }
  0xa1   :  { %3255 = vst [vmem:[#allocation16_spill] sm:$0xff] %v1915_v17 }
  0xa2   :  { %v145_v18 = vshrl.u32 %v144_v16, 23  ;;  %v148_v23 = vand.u32 8388607, %v141_v19  ;;  %v300_v25 = vshrl.u32 %v299_v21, 23 }
  0xa4   :  { %v1660_v20 = vadd.s32 4294967169, %v145_v18  ;;  %v149_v27 = vor.u32 8388608, %v148_v23  ;;  %v1663_v34 = vadd.s32 4294967169, %v300_v25 }
  0xa6   :  { %v151_v22 = vadd.s32 1, %v1660_v20  ;;  %v1956_v54 = vshll.u32 %v149_v27, 8  ;;  %v306_v57 = vadd.s32 1, %v1663_v34  ;;  %v475_v20 = vpop.f32.mrf.mxu2 }
  0xa8   :  { %vm152_vm1 = vcmp.gt.s32.totalorder %v151_v22, 0  ;;  %v190_v62 = vand.u32 65535, %v1956_v54  ;;  %vm307_vm6 = vcmp.gt.s32.totalorder %v306_v57, 0  ;;  %v191_v4 = vshrl.u32 %v1956_v54, 16 }
  0xa9   :  { %v153_v24 = vsel %vm152_vm1, %v151_v22, 0  ;;  %v308_v7 = vsel %vm307_vm6, %v306_v57, 0 }
  0xaa   :  { %v155_v26 = vand.u32 31, %v153_v24  ;;  %v1923_v29 = vshrl.u32 %v153_v24, 5  ;;  %v310_v18 = vand.u32 31, %v308_v7  ;;  %v3235_v24 = vmov 0  }
  0xac   :  { %v1921_v28 = vsub.s32 32, %v155_v26  ;;  %v158_v31 = vshll.u32 %v3237_v30, %v155_v26  ;;  %v161_v33 = vshll.u32 %v3230_v32, %v155_v26  ;;  %v164_v38 = vshll.u32 %v3224_v36, %v155_v26 }
  0xad   :  { %v167_v41 = vshll.u32 %v3222_v39, %v155_v26  ;;  %v170_v44 = vshll.u32 %v3228_v42, %v155_v26  ;;  %vm173_vm2 = vcmp.lt.s32.totalorder %v1923_v29, 1  ;;  %vm176_vm3 = vcmp.lt.s32.totalorder %v1923_v29, 4 }
  0xae   :  { %v159_v35 = vshrl.u32 %v3230_v32, %v1921_v28  ;;  %v162_v37 = vshrl.u32 %v3224_v36, %v1921_v28  ;;  %v165_v40 = vshrl.u32 %v3222_v39, %v1921_v28  ;;  %v168_v43 = vshrl.u32 %v3228_v42, %v1921_v28 }
  0xaf   :  { %v171_v46 = vshrl.u32 %v3226_v45, %v1921_v28  ;;  %vm175_vm4 = vcmp.lt.s32.totalorder %v1923_v29, 3  ;;  %vm174_vm5 = vcmp.lt.s32.totalorder %v1923_v29, 2  ;;  %v498_v26 = vmul.f32 2.0, %v475_v20 }
  0xb0   :  { %v1940_v47 = vor.u32 %v159_v35, %v158_v31  ;;  %v1942_v48 = vor.u32 %v162_v37, %v161_v33  ;;  %v1944_v49 = vor.u32 %v165_v40, %v164_v38  ;;  %v169_v50 = vor.u32 %v168_v43, %v167_v41 }
  0xb1   :  { %v172_v51 = vor.u32 %v171_v46, %v170_v44  ;;  %v1983_v33 = vsub.s32 32, %v310_v18  ;;  %v1987_v40 = vadd.f32 %v498_v26, %v1906_v9  ;;  %v3232_v44 = vand.u32 2147483647, %v1915_v17 }
  0xb2   :  { %v181_v52 = vsel %vm173_vm2, %v1940_v47, %v1942_v48  ;;  %v185_v53 = vsel %vm173_vm2, %v1942_v48, %v1944_v49  ;;  %v182_v55 = vsel %vm176_vm3, %v169_v50, 920167782  ;;  %v1993_v46 = vshrl.u32 %v308_v7, 5 }
  0xb3   :  { %v186_v56 = vsel %vm176_vm3, %v172_v51, 1326507024  ;;  %v183_v58 = vsel %vm175_vm4, %v1944_v49, %v182_v55  ;;  %v323_v43 = vshrl.u32 %v3228_v42, %v1983_v33  ;;  %v314_v51 = vshrl.u32 %v3230_v32, %v1983_v33 }
  0xb4   :  { %v187_v59 = vsel %vm175_vm4, %v169_v50, %v186_v56  ;;  %v184_v60 = vsel %vm174_vm5, %v181_v52, %v183_v58  ;;  %v317_v52 = vshrl.u32 %v3224_v36, %v1983_v33  ;;  %v320_v56 = vshrl.u32 %v3222_v39, %v1983_v33 }
  0xb5   :  { %v188_v61 = vsel %vm174_vm5, %v185_v53, %v187_v59  ;;  %v215_v0 = vshrl.u32 %v184_v60, 16  ;;  %v214_v1 = vand.u32 65535, %v184_v60  ;;  %v322_v53 = vshll.u32 %v3222_v39, %v310_v18 }
  0xb6   :  { %v193_v63 = vshrl.u32 %v188_v61, 16  ;;  %v192_v2 = vand.u32 65535, %v188_v61  ;;  %v326_v57 = vshrl.u32 %v3226_v45, %v1983_v33  ;;  %v505_v58 = vand.u32 2139095040, %v1987_v40 }
  0xb7   :  { %v217_v5 = vmul.u32 %v215_v0, %v190_v62  ;;  %v216_v8 = vmul.u32 %v214_v1, %v190_v62  ;;  %v1975_v10 = vmul.u32 %v214_v1, %v191_v4  ;;  %v219_v31 = vmul.u32 %v215_v0, %v191_v4 }
  0xb8   :  { %v195_v3 = vmul.u32 %v193_v63, %v190_v62  ;;  %v194_v12 = vmul.u32 %v192_v2, %v190_v62  ;;  %v196_v14 = vmul.u32 %v192_v2, %v191_v4  ;;  %v197_v34 = vmul.u32 %v193_v63, %v191_v4 }
  0xb9   :  { %v220_v11 = vshll.u32 %v217_v5, 16  ;;  %v222_v22 = vshll.u32 %v1975_v10, 16  ;;  %v221_v59 = vshrl.u32 %v217_v5, 16  ;;  %v313_v60 = vshll.u32 %v3237_v30, %v310_v18 }
  0xba   :  { %v198_v6 = vshll.u32 %v195_v3, 16  ;;  %v200_v23 = vshll.u32 %v196_v14, 16  ;;  %v316_v61 = vshll.u32 %v3230_v32, %v310_v18  ;;  %v324_v62 = vor.u32 %v323_v43, %v322_v53 }
  0xbb   :  { %vm224_vm7 = vc.u32 %v216_v8, %v220_v11  ;;  %v1977_v16 = vadd.s32 %v220_v11, %v216_v8  ;;  %v199_v63 = vshrl.u32 %v195_v3, 16  ;;  %v303_v0 = vand.u32 8388607, %v3232_v44 }
  0xbc   :  { %vm202_vm8 = vc.u32 %v194_v12, %v198_v6  ;;  %v204_v21 = vadd.s32 %v198_v6, %v194_v12  ;;  %v225_v25 = vsel %vm224_vm7, 1, %v3235_v24  ;;  %v319_v1 = vshll.u32 %v3224_v36, %v310_v18 }
  0xbd   :  { %v203_v27 = vsel %vm202_vm8, 1, %v3235_v24  ;;  %vm228_vm9 = vc.u32 %v1977_v16, %v222_v22  ;;  %v227_v35 = vadd.s32 %v225_v25, %v219_v31  ;;  %v325_v2 = vshll.u32 %v3228_v42, %v310_v18 }
  0xbe   :  { %vm206_vm10 = vc.u32 %v204_v21, %v200_v23  ;;  %v205_v37 = vadd.s32 %v203_v27, %v197_v34  ;;  %v229_v38 = vsel %vm228_vm9, 1, %v3235_v24  ;;  %v2011_v6 = vor.u32 %v314_v51, %v313_v60 }
  0xbf   :  { %v207_v41 = vsel %vm206_vm10, 1, %v3235_v24  ;;  %v231_v50 = vadd.s32 %v229_v38, %v227_v35  ;;  %v2013_v7 = vor.u32 %v317_v52, %v316_v61  ;;  %v2015_v5 = vor.u32 %v320_v56, %v319_v1 }
  0xc0   :  { %v209_v55 = vadd.s32 %v207_v41, %v205_v37  ;;  %v327_v11 = vor.u32 %v326_v57, %v325_v2  ;;  %vm331_vm11 = vcmp.lt.s32.totalorder %v1993_v46, 4  ;;  %v223_v3 = vshrl.u32 %v1975_v10, 16 }
  0xc1   :  { %v232_v4 = vadd.s32 %v231_v50, %v221_v59  ;;  %v337_v12 = vsel %vm331_vm11, %v324_v62, 920167782  ;;  %v506_v20 = vshrl.u32 %v505_v58, 23  ;;  %v157_v18 = vshrl.u32 %v3237_v30, %v1921_v28 }
  0xc2   :  { %v210_v8 = vadd.s32 %v209_v55, %v199_v63  ;;  %v201_v21 = vshrl.u32 %v196_v14, 16  ;;  %v304_v23 = vor.u32 8388608, %v303_v0  ;;  %v178_v25 = vsel %vm176_vm3, %v1944_v49, 2102212464 }
  0xc3   :  { %v233_v26 = vadd.s32 %v232_v4, %v223_v3  ;;  %vm328_vm12 = vcmp.lt.s32.totalorder %v1993_v46, 1  ;;  %vm330_vm13 = vcmp.lt.s32.totalorder %v1993_v46, 3  ;;  %v341_v14 = vsel %vm331_vm11, %v327_v11, 1326507024 }
  0xc4   :  { %v2028_v27 = vadd.s32 %v210_v8, %v201_v21  ;;  %v336_v10 = vsel %vm328_vm12, %v2011_v6, %v2013_v7  ;;  %v338_v28 = vsel %vm330_vm13, %v2015_v5, %v337_v12  ;;  %v177_v49 = vsel %vm173_vm2, %v157_v18, %v1940_v47 }
  0xc5   :  { %v1668_v31 = vadd.s32 4294967169, %v506_v20  ;;  %v179_v34 = vsel %vm175_vm4, %v1942_v48, %v178_v25  ;;  %v2046_v35 = vadd.s32 %v1977_v16, %v222_v22  ;;  %vm329_vm14 = vcmp.lt.s32.totalorder %v1993_v46, 2 }
  0xc6   :  { %v340_v37 = vsel %vm328_vm12, %v2013_v7, %v2015_v5  ;;  %v237_v38 = vadd.s32 1, %v233_v26  ;;  %v339_v41 = vsel %vm329_vm14, %v336_v10, %v338_v28  ;;  %v342_v47 = vsel %vm330_vm13, %v324_v62, %v341_v14 }
  0xc7   :  { %v512_v43 = vadd.s32 1, %v1668_v31  ;;  %vm236_vm15 = vc.u32 %v2028_v27, %v2046_v35  ;;  %v2059_v48 = vshll.u32 %v304_v23, 8  ;;  %v180_v16 = vsel %vm174_vm5, %v177_v49, %v179_v34 }
  0xc8   :  { %v343_v22 = vsel %vm329_vm14, %v340_v37, %v342_v47  ;;  %v370_v50 = vshrl.u32 %v339_v41, 16  ;;  %v238_v51 = vsel %vm236_vm15, %v237_v38, %v233_v26  ;;  %v234_v52 = vmul.u32 %v1956_v54, %v180_v16 }
  0xc9   :  { %vm513_vm0 = vcmp.gt.s32.totalorder %v512_v43, 0  ;;  %v345_v53 = vand.u32 65535, %v2059_v48  ;;  %v348_v55 = vshrl.u32 %v343_v22, 16  ;;  %v369_v59 = vand.u32 65535, %v339_v41 }
  0xca   :  { %v514_v56 = vsel %vm513_vm0, %v512_v43, 0  ;;  %v239_v57 = vadd.s32 %v238_v51, %v234_v52  ;;  %v346_v62 = vshrl.u32 %v2059_v48, 16  ;;  %v347_v0 = vand.u32 65535, %v343_v22 }
  0xcb   :  { %v2067_v58 = vmul.u32 %v370_v50, %v345_v53  ;;  %v516_v60 = vand.u32 31, %v514_v56  ;;  %v2069_v61 = vmul.u32 %v348_v55, %v345_v53  ;;  %v371_v1 = vmul.u32 %v369_v59, %v345_v53 }
  0xcc   :  { %v240_v29 = vadd.s32 536870912, %v239_v57  ;;  %v2073_v2 = vmul.u32 %v369_v59, %v346_v62  ;;  %v349_v3 = vmul.u32 %v347_v0, %v345_v53  ;;  %v3221_v12 = vand.u32 2147483647, %v1987_v40 }
  0xcd   :  { %v375_v63 = vshll.u32 %v2067_v58, 16  ;;  %v2075_v54 = vsub.s32 32, %v516_v60  ;;  %v353_v4 = vshll.u32 %v2069_v61, 16  ;;  %v2083_v20 = vmul.u32 %v347_v0, %v346_v62 }
  0xce   :  { %v2078_v8 = vshrl.u32 %v240_v29, 30  ;;  %v374_v18 = vmul.u32 %v370_v50, %v346_v62  ;;  %v377_v21 = vshll.u32 %v2073_v2, 16  ;;  %v352_v25 = vmul.u32 %v348_v55, %v346_v62 }
  0xcf   :  { %v2080_v11 = vadd.s32 %v375_v63, %v371_v1  ;;  %vm379_vm1 = vc.u32 %v371_v1, %v375_v63  ;;  %v532_v23 = vshrl.u32 %v3226_v45, %v2075_v54  ;;  %vm357_vm2 = vc.u32 %v349_v3, %v353_v4 }
  0xd0   :  { %v359_v26 = vadd.s32 %v353_v4, %v349_v3  ;;  %v529_v10 = vshrl.u32 %v3228_v42, %v2075_v54  ;;  %v242_v28 = vshll.u32 %v2078_v8, 30  ;;  %v380_v14 = vsel %vm379_vm1, 1, %v3235_v24 }
  0xd1   :  { %vm2095_vm3 = vc.u32 %v2080_v11, %v377_v21  ;;  %v531_v31 = vshll.u32 %v3228_v42, %v516_v60  ;;  %v2100_v34 = vshrl.u32 %v514_v56, 5  ;;  %v523_v37 = vshrl.u32 %v3224_v36, %v2075_v54 }
  0xd2   :  { %v526_v38 = vshrl.u32 %v3222_v39, %v2075_v54  ;;  %v528_v41 = vshll.u32 %v3222_v39, %v516_v60  ;;  %v355_v47 = vshll.u32 %v2083_v20, 16  ;;  %v358_v43 = vsel %vm357_vm2, 1, %v3235_v24 }
  0xd3   :  { %v520_v16 = vshrl.u32 %v3230_v32, %v2075_v54  ;;  %v533_v22 = vor.u32 %v532_v23, %v531_v31  ;;  %v382_v50 = vadd.s32 %v380_v14, %v374_v18  ;;  %v522_v51 = vshll.u32 %v3230_v32, %v516_v60 }
  0xd4   :  { %v525_v52 = vshll.u32 %v3224_v36, %v516_v60  ;;  %v530_v53 = vor.u32 %v529_v10, %v528_v41  ;;  %v2113_v55 = vsub.s32 %v239_v57, %v242_v28  ;;  %vm361_vm4 = vc.u32 %v359_v26, %v355_v47 }
  0xd5   :  { %v384_v56 = vsel %vm2095_vm3, 1, %v3235_v24  ;;  %v519_v59 = vshll.u32 %v3237_v30, %v516_v60  ;;  %v509_v29 = vand.u32 8388607, %v3221_v12  ;;  %v2121_v62 = vor.u32 %v523_v37, %v522_v51 }
  0xd6   :  { %v2123_v63 = vor.u32 %v526_v38, %v525_v52  ;;  %vm537_vm5 = vcmp.lt.s32.totalorder %v2100_v34, 4  ;;  %v360_v0 = vadd.s32 %v358_v43, %v352_v25  ;;  %v362_v4 = vsel %vm361_vm4, 1, %v3235_v24 }
  0xd7   :  { %v2126_v1 = vor.u32 %v520_v16, %v519_v59  ;;  %v547_v57 = vsel %vm537_vm5, %v533_v22, 1326507024  ;;  %v543_v60 = vsel %vm537_vm5, %v530_v53, 920167782  ;;  %v245_v3 = vsub.s32 0, %v2113_v55  ;;  %v495_v22 = vpop.f32.mrf.mxu3 }
  0xd8   :  { %v386_v18 = vadd.s32 %v384_v56, %v382_v50  ;;  %vm534_vm6 = vcmp.lt.s32.totalorder %v2100_v34, 1  ;;  %vm536_vm7 = vcmp.lt.s32.totalorder %v2100_v34, 3  ;;  %vm244_vm8 = vcmp.lt.s32.totalorder %v2113_v55, 0 }
  0xd9   :  { %v510_v23 = vor.u32 8388608, %v509_v29  ;;  %v546_v25 = vsel %vm534_vm6, %v2121_v62, %v2123_v63  ;;  %v548_v26 = vsel %vm536_vm7, %v530_v53, %v547_v57  ;;  %v364_v10 = vadd.s32 %v362_v4, %v360_v0 }
  0xda   :  { %v542_v28 = vsel %vm534_vm6, %v2126_v1, %v2121_v62  ;;  %v544_v14 = vsel %vm536_vm7, %v2123_v63, %v543_v60  ;;  %v376_v49 = vshrl.u32 %v2067_v58, 16  ;;  %vm535_vm9 = vcmp.lt.s32.totalorder %v2100_v34, 2 }
  0xdb   :  { %v246_v31 = vsel %vm244_vm8, %v245_v3, %v2113_v55  ;;  %v354_v37 = vshrl.u32 %v2069_v61, 16  ;;  %v549_v38 = vsel %vm535_vm9, %v546_v25, %v548_v26  ;;  %v545_v47 = vsel %vm535_vm9, %v542_v28, %v544_v14 }
  0xdc   :  { %v387_v41 = vadd.s32 %v386_v18, %v376_v49  ;;  %v2158_v43 = vshll.u32 %v510_v23, 8  ;;  %v247_v50 = vclz %v246_v31  ;;  %v378_v58 = vshrl.u32 %v2073_v2, 16 }
  0xdd   :  { %v365_v16 = vadd.s32 %v364_v10, %v354_v37  ;;  %v554_v51 = vshrl.u32 %v549_v38, 16  ;;  %v333_v52 = vsel %vm331_vm11, %v2015_v5, 2102212464  ;;  %v356_v61 = vshrl.u32 %v2083_v20, 16 }
  0xde   :  { %v576_v53 = vshrl.u32 %v545_v47, 16  ;;  %v312_v56 = vshrl.u32 %v3237_v30, %v1983_v33  ;;  %v388_v59 = vadd.s32 %v387_v41, %v378_v58  ;;  %v551_v29 = vand.u32 65535, %v2158_v43 }
  0xdf   :  { %v499_v0 = vmul.f32 2.0, %v495_v22  ;;  %v2168_v57 = vadd.s32 %v365_v16, %v356_v61  ;;  %v1661_v4 = vadd.s32 4294967294, %v247_v50  ;;  %v334_v5 = vsel %vm330_vm13, %v2013_v7, %v333_v52 }
  0xe0   :  { %v332_v60 = vsel %vm328_vm12, %v312_v56, %v2011_v6  ;;  %v2176_v20 = vmul.u32 %v554_v51, %v551_v29  ;;  %v2181_v33 = vadd.s32 %v2080_v11, %v377_v21  ;;  %v2183_v3 = vmul.u32 %v576_v53, %v551_v29 }
  0xe1   :  { %v392_v18 = vadd.s32 1, %v388_v59  ;;  %v553_v23 = vand.u32 65535, %v549_v38  ;;  %v2186_v25 = vadd.f32 %v499_v0, %v1908_v13  ;;  %v335_v6 = vsel %vm329_vm14, %v332_v60, %v334_v5 }
  0xe2   :  { %vm391_vm10 = vc.u32 %v2168_v57, %v2181_v33  ;;  %v575_v7 = vand.u32 65535, %v545_v47  ;;  %vm1662_vm11 = vcmp.lt.s32.totalorder %v1661_v4, 0  ;;  %v552_v2 = vshrl.u32 %v2158_v43, 16 }
  0xe3   :  { %3258 = vst [vmem:[#allocation17_spill] sm:$0xff] %v2186_v25  ;;  %v559_v11 = vshll.u32 %v2176_v20, 16  ;;  %v581_v21 = vshll.u32 %v2183_v3, 16  ;;  %v660_v26 = vand.u32 2139095040, %v2186_v25  ;;  %v389_v10 = vmul.u32 %v2059_v48, %v335_v6  ;;  %v836_v48 = vpop.f32.mrf.mxu2 }
  0xe4   :  { %v393_v28 = vsel %vm391_vm10, %v392_v18, %v388_v59  ;;  %v555_v14 = vmul.u32 %v553_v23, %v551_v29  ;;  %v557_v49 = vmul.u32 %v553_v23, %v552_v2  ;;  %v250_v46 = vsel %vm1662_vm11, 0, %v1661_v4 }
  0xe5   :  { %v577_v31 = vmul.u32 %v575_v7, %v551_v29  ;;  %v579_v37 = vmul.u32 %v575_v7, %v552_v2  ;;  %v661_v38 = vshrl.u32 %v660_v26, 23  ;;  %v394_v47 = vadd.s32 %v393_v28, %v389_v10 }
  0xe6   :  { %vm563_vm12 = vc.u32 %v555_v14, %v559_v11  ;;  %v565_v41 = vadd.s32 %v559_v11, %v555_v14  ;;  %v255_v50 = vsub.s32 4294967266, %v250_v46  ;;  %v561_v58 = vshll.u32 %v557_v49, 16 }
  0xe7   :  { %vm585_vm13 = vc.u32 %v577_v31, %v581_v21  ;;  %v587_v16 = vadd.s32 %v581_v21, %v577_v31  ;;  %v1671_v22 = vadd.s32 4294967169, %v661_v38  ;;  %v564_v52 = vsel %vm563_vm12, 1, %v3235_v24 }
  0xe8   :  { %v583_v61 = vshll.u32 %v579_v37, 16  ;;  %v558_v59 = vmul.u32 %v554_v51, %v552_v2  ;;  %vm567_vm14 = vc.u32 %v565_v41, %v561_v58  ;;  %v586_v0 = vsel %vm585_vm13, 1, %v3235_v24 }
  0xe9   :  { %v667_v56 = vadd.s32 1, %v1671_v22  ;;  %v395_v29 = vadd.s32 536870912, %v394_v47  ;;  %v580_v4 = vmul.u32 %v576_v53, %v552_v2  ;;  %v256_v60 = vadd.s32 127, %v255_v50 }
  0xea   :  { %vm589_vm15 = vc.u32 %v587_v16, %v583_v61  ;;  %v566_v5 = vadd.s32 %v564_v52, %v558_v59  ;;  %v859_v18 = vmul.f32 2.0, %v836_v48  ;;  %v568_v23 = vsel %vm567_vm14, 1, %v3235_v24 }
  0xeb   :  { %v588_v6 = vadd.s32 %v586_v0, %v580_v4  ;;  %vm668_vm0 = vcmp.gt.s32.totalorder %v667_v56, 0  ;;  %v251_v7 = vsub.s32 32, %v250_v46  ;;  %v590_v11 = vsel %vm589_vm15, 1, %v3235_v24 }
  0xec   :  { %v235_v21 = vadd.s32 %v2046_v35, %v2028_v27  ;;  %v2203_v51 = vshrl.u32 %v395_v29, 30  ;;  %v257_v26 = vshll.u32 %v256_v60, 23  ;;  %v570_v10 = vadd.s32 %v568_v23, %v566_v5 }
  0xed   :  { %v669_v28 = vsel %vm668_vm0, %v667_v56, 0  ;;  %v2206_v53 = vadd.f32 %v859_v18, %v1906_v9  ;;  %v592_v2 = vadd.s32 %v590_v11, %v588_v6  ;;  %v560_v31 = vshrl.u32 %v2176_v20, 16 }
  0xee   :  { %v253_v14 = vshrl.u32 %v235_v21, %v251_v7  ;;  %v397_v38 = vshll.u32 %v2203_v51, 30  ;;  %v582_v41 = vshrl.u32 %v2183_v3, 16  ;;  %v671_v22 = vand.u32 31, %v669_v28 }
  0xef   :  { %v252_v50 = vshll.u32 %v2113_v55, %v250_v46  ;;  %v258_v27 = vor.u32 4788187, %v257_v26  ;;  %v571_v35 = vadd.s32 %v570_v10, %v560_v31  ;;  %v866_v58 = vand.u32 2139095040, %v2206_v53 }
  0xf0   :  { %v518_v52 = vshrl.u32 %v3237_v30, %v2075_v54  ;;  %v539_v56 = vsel %vm537_vm5, %v2123_v63, 2102212464  ;;  %v593_v48 = vadd.s32 %v592_v2, %v582_v41  ;;  %v562_v59 = vshrl.u32 %v557_v49, 16 }
  0xf1   :  { %v254_v20 = vor.u32 %v253_v14, %v252_v50  ;;  %v2218_v0 = vsub.s32 %v394_v47, %v397_v38  ;;  %v584_v3 = vshrl.u32 %v579_v37, 16  ;;  %v2223_v46 = vsub.s32 32, %v671_v22 }
  0xf2   :  { %v538_v55 = vsel %vm534_vm6, %v518_v52, %v2126_v1  ;;  %v259_v29 = vand.u32 2147483647, %v258_v27  ;;  %v540_v54 = vsel %vm536_vm7, %v2121_v62, %v539_v56  ;;  %v2228_v4 = vadd.s32 %v571_v35, %v562_v59 }
  0xf3   :  { %v867_v63 = vshrl.u32 %v866_v58, 23  ;;  %v594_v60 = vadd.s32 %v593_v48, %v584_v3  ;;  %v261_v5 = vcvt.s32.f32 %v254_v20  ;;  %v2230_v49 = vadd.s32 %v587_v16, %v583_v61 }
  0xf4   :  { %v400_v47 = vsub.s32 0, %v2218_v0  ;;  %v541_v1 = vsel %vm535_vm9, %v538_v55, %v540_v54  ;;  %v684_v37 = vshrl.u32 %v3228_v42, %v2223_v46  ;;  %v687_v18 = vshrl.u32 %v3226_v45, %v2223_v46 }
  0xf5   :  { %v262_v23 = vmul.f32 %v261_v5, %v259_v29  ;;  %vm399_vm1 = vcmp.lt.s32.totalorder %v2218_v0, 0  ;;  %vm597_vm2 = vc.u32 %v2228_v4, %v2230_v49  ;;  %v1676_v62 = vadd.s32 4294967169, %v867_v63 }
  0xf6   :  { %v598_v16 = vadd.s32 1, %v594_v60  ;;  %v3220_v61 = vand.u32 2147483647, %v2186_v25  ;;  %v683_v6 = vshll.u32 %v3222_v39, %v671_v22  ;;  %v686_v34 = vshll.u32 %v3228_v42, %v671_v22 }
  0xf7   :  { %v2245_v7 = vshrl.u32 %v669_v28, 5  ;;  %v675_v11 = vshrl.u32 %v3230_v32, %v2223_v46  ;;  %v678_v21 = vshrl.u32 %v3224_v36, %v2223_v46  ;;  %v681_v26 = vshrl.u32 %v3222_v39, %v2223_v46 }
  0xf8   :  { %v401_v10 = vsel %vm399_vm1, %v400_v47, %v2218_v0  ;;  %v685_v2 = vor.u32 %v684_v37, %v683_v6  ;;  %v688_v14 = vor.u32 %v687_v18, %v686_v34  ;;  %v674_v31 = vshll.u32 %v3237_v30, %v671_v22 }
  0xf9   :  { %v677_v38 = vshll.u32 %v3230_v32, %v671_v22  ;;  %v680_v28 = vshll.u32 %v3224_v36, %v671_v22  ;;  %v873_v41 = vadd.s32 1, %v1676_v62  ;;  %v263_v50 = vxor.u32 2147483648, %v262_v23 }
  0xfa   :  { %v595_v27 = vmul.u32 %v2158_v43, %v541_v1  ;;  %v599_v35 = vsel %vm597_vm2, %v598_v16, %v594_v60  ;;  %v664_v58 = vand.u32 8388607, %v3220_v61  ;;  %v2263_v52 = vor.u32 %v675_v11, %v674_v31 }
  0xfb   :  { %v2265_v56 = vor.u32 %v678_v21, %v677_v38  ;;  %v2267_v48 = vor.u32 %v681_v26, %v680_v28  ;;  %vm692_vm3 = vcmp.lt.s32.totalorder %v2245_v7, 4  ;;  %v402_v22 = vclz %v401_v10 }
  0xfc   :  { %v698_v20 = vsel %vm692_vm3, %v685_v2, 920167782  ;;  %v702_v43 = vsel %vm692_vm3, %v688_v14, 1326507024  ;;  %vm143_vm4 = vcmp.lt.s32.totalorder %v1911_v15, 0  ;;  %v600_v59 = vadd.s32 %v599_v35, %v595_v27 }
  0xfd   :  { %vm874_vm5 = vcmp.gt.s32.totalorder %v873_v41, 0  ;;  %v264_v55 = vsel %vm143_vm4, %v263_v50, %v262_v23  ;;  %v665_v3 = vor.u32 8388608, %v664_v58  ;;  %vm689_vm6 = vcmp.lt.s32.totalorder %v2245_v7, 1 }
  0xfe   :  { %vm691_vm7 = vcmp.lt.s32.totalorder %v2245_v7, 3  ;;  %v697_v29 = vsel %vm689_vm6, %v2263_v52, %v2265_v56  ;;  %v701_v63 = vsel %vm689_vm6, %v2265_v56, %v2267_v48  ;;  %vm2294_vm8 = vcmp.le.f32.partialorder %v141_v19, 0.7853982 }
  0xff   :  { %v699_v54 = vsel %vm691_vm7, %v2267_v48, %v698_v20  ;;  %v703_v60 = vsel %vm691_vm7, %v685_v2, %v702_v43  ;;  %v1664_v47 = vadd.s32 4294967294, %v402_v22  ;;  %v3219_v1 = vand.u32 2147483647, %v2206_v53 }
 0x100   :  { %v875_v37 = vsel %vm874_vm5, %v873_v41, 0  ;;  %v2302_v18 = vsel %vm2294_vm8, %v1911_v15, %v264_v55  ;;  %v601_v23 = vadd.s32 536870912, %v600_v59  ;;  %vm690_vm9 = vcmp.lt.s32.totalorder %v2245_v7, 2 }
 0x101   :  { %v2307_v62 = vsel %vm690_vm9, %v697_v29, %v699_v54  ;;  %v2311_v19 = vsel %vm690_vm9, %v701_v63, %v703_v60  ;;  %v265_v16 = vsub.s32 4, %v2078_v8  ;;  %v2314_v6 = vshll.u32 %v665_v3, 8 }
 0x102   :  { %v877_v34 = vand.u32 31, %v875_v37  ;;  %v2318_v11 = vmul.f32 %v2302_v18, %v2302_v18  ;;  %vm1665_vm10 = vcmp.lt.s32.totalorder %v1664_v47, 0  ;;  %v870_v21 = vand.u32 8388607, %v3219_v1 }
 0x103   :  { %v2322_v26 = vshrl.u32 %v601_v23, 30  ;;  %v709_v10 = vshrl.u32 %v2311_v19, 16  ;;  %v731_v2 = vshrl.u32 %v2307_v62, 16  ;;  %v2331_v31 = vsel %vm143_vm4, %v265_v16, %v2078_v8 }
 0x104   :  { %v2326_v14 = vsub.s32 32, %v877_v34  ;;  %v2333_v38 = vsel %vm1665_vm10, 0, %v1664_v47  ;;  %v706_v28 = vand.u32 65535, %v2314_v6  ;;  %v2337_v41 = vmul.f32 -0.001358992, %v2318_v11 }
 0x105   :  { %v871_v50 = vor.u32 8388608, %v870_v21  ;;  %v603_v58 = vshll.u32 %v2322_v26, 30  ;;  %v708_v22 = vand.u32 65535, %v2311_v19  ;;  %v730_v43 = vand.u32 65535, %v2307_v62 }
 0x106   :  { %v881_v27 = vshrl.u32 %v3230_v32, %v2326_v14  ;;  %v884_v35 = vshrl.u32 %v3224_v36, %v2326_v14  ;;  %v2345_v8 = vmul.u32 %v709_v10, %v706_v28  ;;  %v2347_v20 = vmul.u32 %v731_v2, %v706_v28 }
 0x107   :  { %v880_v55 = vshll.u32 %v3237_v30, %v877_v34  ;;  %v883_v3 = vshll.u32 %v3230_v32, %v877_v34  ;;  %v887_v29 = vshrl.u32 %v3222_v39, %v2326_v14  ;;  %v2354_v54 = vshrl.u32 %v875_v37, 5 }
 0x108   :  { %v886_v63 = vshll.u32 %v3224_v36, %v877_v34  ;;  %v889_v60 = vshll.u32 %v3222_v39, %v877_v34  ;;  %v890_v47 = vshrl.u32 %v3228_v42, %v2326_v14  ;;  %v892_v62 = vshll.u32 %v3228_v42, %v877_v34 }
 0x109   :  { %v2360_v23 = vor.u32 %v881_v27, %v880_v55  ;;  %v2362_v19 = vor.u32 %v884_v35, %v883_v3  ;;  %v893_v16 = vshrl.u32 %v3226_v45, %v2326_v14  ;;  %v707_v21 = vshrl.u32 %v2314_v6, 16 }
 0x10a   :  { %v714_v37 = vshll.u32 %v2345_v8, 16  ;;  %v736_v1 = vshll.u32 %v2347_v20, 16  ;;  %v891_v61 = vor.u32 %v890_v47, %v889_v60  ;;  %v2370_v12 = vsub.s32 %v600_v59, %v603_v58 }
 0x10b   :  { %v710_v39 = vmul.u32 %v708_v22, %v706_v28  ;;  %v2372_v36 = vor.u32 %v887_v29, %v886_v63  ;;  %v894_v27 = vor.u32 %v893_v16, %v892_v62  ;;  %v732_v35 = vmul.u32 %v730_v43, %v706_v28 }
 0x10c   :  { %v2374_v55 = vmul.u32 %v730_v43, %v707_v21  ;;  %vm895_vm11 = vcmp.lt.s32.totalorder %v2354_v54, 1  ;;  %vm898_vm12 = vcmp.lt.s32.totalorder %v2354_v54, 4  ;;  %v2378_v34 = vmul.u32 %v708_v22, %v707_v21 }
 0x10d   :  { %v903_v3 = vsel %vm895_vm11, %v2360_v23, %v2362_v19  ;;  %v904_v59 = vsel %vm898_vm12, %v891_v61, 920167782  ;;  %v2386_v58 = vshll.u32 %v871_v50, 8  ;;  %vm2388_vm13 = vc.u32 %v710_v39, %v714_v37 }
 0x10e   :  { %vm740_vm14 = vc.u32 %v732_v35, %v736_v1  ;;  %v2392_v43 = vadd.s32 %v736_v1, %v732_v35  ;;  %vm897_vm15 = vcmp.lt.s32.totalorder %v2354_v54, 3  ;;  %v720_v22 = vadd.s32 %v714_v37, %v710_v39 }
 0x10f   :  { %vm896_vm0 = vcmp.lt.s32.totalorder %v2354_v54, 2  ;;  %v905_v29 = vsel %vm897_vm15, %v2372_v36, %v904_v59  ;;  %v908_v50 = vsel %vm898_vm12, %v894_v27, 1326507024  ;;  %v410_v63 = vsub.s32 4294967266, %v2333_v38 }
 0x110   :  { %v3233_v60 = vshll.u32 %v2374_v55, 16  ;;  %v2405_v1 = vsel %vm896_vm0, %v903_v3, %v905_v29  ;;  %v907_v39 = vsel %vm895_vm11, %v2362_v19, %v2372_v36  ;;  %v716_v47 = vshll.u32 %v2378_v34, 16 }
 0x111   :  { %v741_v62 = vsel %vm740_vm14, 1, %v3235_v24  ;;  %v909_v16 = vsel %vm897_vm15, %v891_v61, %v908_v50  ;;  %v3234_v37 = vshrl.u32 %v2405_v1, 16  ;;  %v606_v27 = vsub.s32 0, %v2370_v12 }
 0x112   :  { %v719_v35 = vsel %vm2388_vm13, 1, %v3235_v24  ;;  %v735_v3 = vmul.u32 %v731_v2, %v707_v21  ;;  %vm744_vm1 = vc.u32 %v2392_v43, %v3233_v60  ;;  %v713_v59 = vmul.u32 %v709_v10, %v707_v21 }
 0x113   :  { %vm722_vm2 = vc.u32 %v720_v22, %v716_v47  ;;  %v910_v29 = vsel %vm896_vm0, %v907_v39, %v909_v16  ;;  %v912_v61 = vand.u32 65535, %v2386_v58  ;;  %v406_v50 = vsub.s32 32, %v2333_v38 }
 0x114   :  { %v411_v45 = vadd.s32 127, %v410_v63  ;;  %vm605_vm4 = vcmp.lt.s32.totalorder %v2370_v12, 0  ;;  %v743_v42 = vadd.s32 %v741_v62, %v735_v3  ;;  %v721_v28 = vadd.s32 %v719_v35, %v713_v59 }
 0x115   :  { %v745_v2 = vsel %vm744_vm1, 1, %v3235_v24  ;;  %v915_v32 = vshrl.u32 %v910_v29, 16  ;;  %v2431_v44 = vmul.u32 %v3234_v37, %v912_v61  ;;  %v277_v21 = vmul.f32 -0.00019511016, %v2318_v11 }
 0x116   :  { %v390_v22 = vadd.s32 %v2181_v33, %v2168_v57  ;;  %v723_v63 = vsel %vm722_vm2, 1, %v3235_v24  ;;  %v271_v39 = vadd.f32 0.041655596, %v2337_v41  ;;  %v607_v47 = vsel %vm605_vm4, %v606_v27, %v2370_v12 }
 0x117   :  { %v2442_v62 = vmul.u32 %v915_v32, %v912_v61  ;;  %v936_v16 = vand.u32 65535, %v2405_v1  ;;  %v407_v35 = vshll.u32 %v2218_v0, %v2333_v38  ;;  %v747_v59 = vadd.s32 %v745_v2, %v743_v42 }
 0x118   :  { %v408_v3 = vshrl.u32 %v390_v22, %v406_v50  ;;  %v914_v10 = vand.u32 65535, %v910_v29  ;;  %v412_v60 = vshll.u32 %v411_v45, 23  ;;  %v725_v37 = vadd.s32 %v723_v63, %v721_v28 }
 0x119   :  { %v913_v57 = vshrl.u32 %v2386_v58, 16  ;;  %v942_v33 = vshll.u32 %v2431_v44, 16  ;;  %v278_v24 = vadd.f32 0.008332121, %v277_v21  ;;  %v608_v41 = vclz %v607_v47 }
 0x11a   :  { %v737_v27 = vshrl.u32 %v2347_v20, 16  ;;  %v920_v30 = vshll.u32 %v2442_v62, 16  ;;  %v272_v15 = vmul.f32 %v271_v39, %v2318_v11  ;;  %v715_v25 = vshrl.u32 %v2345_v8, 16  ;;  %v856_v20 = vpop.f32.mrf.mxu3 }
 0x11b   :  { %v938_v0 = vmul.u32 %v936_v16, %v912_v61  ;;  %v2453_v38 = vmul.u32 %v936_v16, %v913_v57  ;;  %v409_v42 = vor.u32 %v408_v3, %v407_v35  ;;  %v916_v29 = vmul.u32 %v914_v10, %v912_v61 }
 0x11c   :  { %v748_v45 = vadd.s32 %v747_v59, %v737_v27  ;;  %v2455_v50 = vmul.u32 %v914_v10, %v913_v57  ;;  %v413_v28 = vor.u32 4788187, %v412_v60  ;;  %v726_v2 = vadd.s32 %v725_v37, %v715_v25 }
 0x11d   :  { %vm946_vm5 = vc.u32 %v938_v0, %v942_v33  ;;  %v2457_v21 = vadd.s32 %v942_v33, %v938_v0  ;;  %v1669_v22 = vadd.s32 4294967294, %v608_v41  ;;  %v739_v63 = vshrl.u32 %v2374_v55, 16 }
 0x11e   :  { %vm924_vm10 = vc.u32 %v916_v29, %v920_v30  ;;  %v926_v39 = vadd.s32 %v920_v30, %v916_v29  ;;  %v3263_v8 = vmov 683565275   ;;  %v694_v61 = vsel %vm692_vm3, %v2267_v48, 2102212464 }
 0x11f   :  { %v673_v47 = vshrl.u32 %v3263_v8, %v2223_v46  ;;  %v717_v10 = vshrl.u32 %v2378_v34, 16  ;;  %v944_v25 = vshll.u32 %v2453_v38, 16  ;;  %v749_v60 = vadd.s32 %v748_v45, %v739_v63 }
 0x120   :  { %v922_v37 = vshll.u32 %v2455_v50, 16  ;;  %v3264_v16 = vmov 0   ;;  %v860_v3 = vmul.f32 2.0, %v856_v20  ;;  %v3265_v46 = vshrl.u32 %v2405_v1, 16 }
 0x121   :  { %v947_v35 = vsel %vm946_vm5, 1, %v3264_v16  ;;  %v2469_v59 = vadd.s32 %v726_v2, %v717_v10  ;;  %v925_v30 = vsel %vm924_vm10, 1, %v3264_v16  ;;  %vm950_vm3 = vc.u32 %v2457_v21, %v944_v25 }
 0x122   :  { %v941_v33 = vmul.u32 %v3265_v46, %v913_v57  ;;  %vm298_vm13 = vcmp.lt.s32.totalorder %v1915_v17, 0  ;;  %vm1670_vm14 = vcmp.lt.s32.totalorder %v1669_v22, 0  ;;  %v919_v48 = vmul.u32 %v915_v32, %v913_v57 }
 0x123   :  { %vm928_vm1 = vc.u32 %v926_v39, %v922_v37  ;;  %v2479_v34 = vadd.f32 %v860_v3, %v1908_v13  ;;  %v693_v41 = vsel %vm689_vm6, %v673_v47, %v2263_v52  ;;  %v695_v1 = vsel %vm691_vm7, %v2265_v56, %v694_v61 }
 0x124   :  { %v3266_v27 = vshll.u32 %v2374_v55, 16  ;;  %v949_v45 = vadd.s32 %v947_v35, %v941_v33  ;;  %v753_v29 = vadd.s32 1, %v749_v60  ;;  %v927_v32 = vadd.s32 %v925_v30, %v919_v48 }
 0x125   :  { %v951_v57 = vsel %vm950_vm3, 1, %v3264_v16  ;;  %v1021_v2 = vand.u32 2139095040, %v2479_v34  ;;  %v279_v20 = vmul.f32 %v278_v24, %v2318_v11  ;;  %v2495_v63 = vsel %vm1670_vm14, 0, %v1669_v22 }
 0x126   :  { %v2490_v0 = vadd.s32 %v2392_v43, %v3266_v27  ;;  %v929_v52 = vsel %vm928_vm1, 1, %v3264_v16  ;;  %v3267_v56 = vsel %vm2294_vm8, 0, %v2331_v31  ;;  %v414_v43 = vand.u32 2147483647, %v413_v28 }
 0x127   :  { %v285_v55 = vadd.s32 3, %v3267_v56  ;;  %v696_v39 = vsel %vm690_vm9, %v693_v41, %v695_v1  ;;  %v1022_v47 = vshrl.u32 %v1021_v2, 23  ;;  %v273_v61 = vadd.f32 -0.4999988, %v272_v15  ;;  %v1197_v56 = vpop.f32.mrf.mxu2 }
 0x128   :  { %vm752_vm6 = vc.u32 %v2469_v59, %v2490_v0  ;;  %v416_v10 = vcvt.s32.f32 %v409_v42  ;;  %v420_v24 = vsub.s32 4, %v2203_v51  ;;  %v953_v22 = vadd.s32 %v951_v57, %v949_v45 }
 0x129   :  { %v616_v37 = vsub.s32 4294967266, %v2495_v63  ;;  %v754_v35 = vsel %vm752_vm6, %v753_v29, %v749_v60  ;;  %v931_v3 = vadd.s32 %v929_v52, %v927_v32  ;;  %v1679_v30 = vadd.s32 4294967169, %v1022_v47 }
 0x12a   :  { %v280_v46 = vadd.f32 -0.16666654, %v279_v20  ;;  %v3268_v5 = vand.u32 2147483647, %v1915_v17  ;;  %v750_v7 = vmul.u32 %v2314_v6, %v696_v39  ;;  %v943_v15 = vshrl.u32 %v2431_v44, 16 }
 0x12b   :  { %v2516_v42 = vand.u32 3, %v285_v55  ;;  %v417_v28 = vmul.f32 %v416_v10, %v414_v43  ;;  %v921_v33 = vshrl.u32 %v2442_v62, 16  ;;  %v1028_v48 = vadd.s32 1, %v1679_v30 }
 0x12c   :  { %vm2510_vm7 = vcmp.le.f32.partialorder %v3268_v5, 0.7853982  ;;  %v274_v60 = vmul.f32 %v273_v61, %v2318_v11  ;;  %v2523_v41 = vsel %vm298_vm13, %v420_v24, %v2203_v51  ;;  %v2525_v1 = vadd.s32 %v754_v35, %v750_v7 }
 0x12d   :  { %v954_v27 = vadd.s32 %v953_v22, %v943_v15  ;;  %v617_v45 = vadd.s32 127, %v616_v37  ;;  %v900_v44 = vsel %vm898_vm12, %v2372_v36, 2102212464  ;;  %v932_v6 = vadd.s32 %v931_v3, %v921_v33 }
 0x12e   :  { %vm1029_vm8 = vcmp.gt.s32.totalorder %v1028_v48, 0  ;;  %v281_v62 = vmul.f32 %v280_v46, %v2318_v11  ;;  %v879_v29 = vshrl.u32 %v3263_v8, %v2326_v14  ;;  %v945_v32 = vshrl.u32 %v2453_v38, 16 }
 0x12f   :  { %v1030_v57 = vsel %vm1029_vm8, %v1028_v48, 0  ;;  %v418_v51 = vxor.u32 2147483648, %v417_v28  ;;  %v612_v2 = vsub.s32 32, %v2495_v63  ;;  %v923_v20 = vshrl.u32 %v2455_v50, 16 }
 0x130   :  { %v1032_v52 = vand.u32 31, %v1030_v57  ;;  %v756_v55 = vadd.s32 536870912, %v2525_v1  ;;  %v899_v36 = vsel %vm895_vm11, %v879_v29, %v2360_v23  ;;  %v901_v11 = vsel %vm897_vm15, %v2362_v19, %v900_v44 }
 0x131   :  { %v955_v14 = vadd.s32 %v954_v27, %v945_v32  ;;  %v618_v39 = vshll.u32 %v617_v45, 23  ;;  %v2546_v47 = vadd.s32 %v932_v6, %v923_v20  ;;  %v2550_v61 = vadd.f32 1.0, %v274_v60 }
 0x132   :  { %v2548_v50 = vsub.s32 32, %v1032_v52  ;;  %v596_v10 = vadd.s32 %v2230_v49, %v2228_v4  ;;  %v3242_v23 = vand.u32 2147483647, %v2479_v34  ;;  %v1220_v24 = vmul.f32 2.0, %v1197_v56 }
 0x133   :  { %v282_v22 = vadd.f32 1.0, %v281_v62  ;;  %v419_v19 = vsel %vm298_vm13, %v418_v51, %v417_v28  ;;  %v902_v37 = vsel %vm896_vm0, %v899_v36, %v901_v11  ;;  %v2562_v35 = vadd.s32 %v2457_v21, %v944_v25 }
 0x134   :  { %v613_v3 = vshll.u32 %v2370_v12, %v2495_v63  ;;  %v614_v30 = vshrl.u32 %v596_v10, %v612_v2  ;;  %v2566_v4 = vshrl.u32 %v756_v55, 30  ;;  %v959_v49 = vadd.s32 1, %v955_v14 }
 0x135   :  { %v619_v46 = vor.u32 4788187, %v618_v39  ;;  %vm958_vm9 = vc.u32 %v2546_v47, %v2562_v35  ;;  %v3272_v5 = vmov 2475754826   ;;  %v3273_v7 = vmov 2131351028  }
 0x136   :  { %3271 = vst [vmem:[#allocation18_spill] sm:$0xff] %v2566_v4  ;;  %v1036_v54 = vshrl.u32 %v3272_v5, %v2548_v50  ;;  %v1039_v38 = vshrl.u32 %v3273_v7, %v2548_v50  ;;  %v956_v21 = vmul.u32 %v2386_v58, %v902_v37  ;;  %v1025_v25 = vand.u32 8388607, %v3242_v23 }
 0x137   :  { %v1035_v12 = vshll.u32 %v3263_v8, %v1032_v52  ;;  %v2579_v63 = vadd.f32 %v1220_v24, %v1906_v9  ;;  %v1038_v15 = vshll.u32 %v3272_v5, %v1032_v52  ;;  %v3274_v28 = vmov 2102212464  }
 0x138   :  { %v1042_v33 = vshrl.u32 %v3274_v28, %v2548_v50  ;;  %v1044_v48 = vshll.u32 %v3274_v28, %v1032_v52  ;;  %v3275_v60 = vmov 920167782   ;;  %v758_v58 = vshll.u32 %v2566_v4, 30 }
 0x139   :  { %v1045_v27 = vshrl.u32 %v3275_v60, %v2548_v50  ;;  %v960_v45 = vsel %vm958_vm9, %v959_v49, %v955_v14  ;;  %v2588_v44 = vshrl.u32 %v1030_v57, 5  ;;  %v1041_v6 = vshll.u32 %v3273_v7, %v1032_v52 }
 0x13a   :  { %v2591_v62 = vor.u32 %v1036_v54, %v1035_v12  ;;  %v2593_v9 = vor.u32 %v1039_v38, %v1038_v15  ;;  %v3276_v32 = vmov 1326507024   ;;  %v2598_v2 = vmul.f32 %v282_v22, %v2302_v18 }
 0x13b   :  { %v1046_v29 = vor.u32 %v1045_v27, %v1044_v48  ;;  %v1048_v51 = vshrl.u32 %v3276_v32, %v2548_v50  ;;  %v615_v56 = vor.u32 %v614_v30, %v613_v3  ;;  %v1227_v55 = vand.u32 2139095040, %v2579_v63 }
 0x13c   :  { %v2602_v57 = vadd.s32 %v960_v45, %v956_v21  ;;  %v1026_v36 = vor.u32 8388608, %v1025_v25  ;;  %v1043_v11 = vor.u32 %v1042_v33, %v1041_v6  ;;  %v1047_v14 = vshll.u32 %v3275_v60, %v1032_v52 }
 0x13d   :  { %v2608_v39 = vsel %vm2510_vm7, %v1915_v17, %v419_v19  ;;  %v620_v10 = vand.u32 2147483647, %v619_v46  ;;  %vm1050_vm11 = vcmp.lt.s32.totalorder %v2588_v44, 1  ;;  %vm1053_vm12 = vcmp.lt.s32.totalorder %v2588_v44, 4 }
 0x13e   :  { %3277 = vst [vmem:[#allocation19_spill] sm:$0xff] %v2608_v39  ;;  %v2613_v18 = vsub.s32 %v2525_v1, %v758_v58  ;;  %v1049_v24 = vor.u32 %v1048_v51, %v1047_v14  ;;  %v1058_v22 = vsel %vm1050_vm11, %v2591_v62, %v2593_v9  ;;  %v1059_v52 = vsel %vm1053_vm12, %v1046_v29, 920167782 }
 0x13f   :  { %v622_v37 = vcvt.s32.f32 %v615_v56  ;;  %vm1052_vm15 = vcmp.lt.s32.totalorder %v2588_v44, 3  ;;  %v1228_v3 = vshrl.u32 %v1227_v55, 23  ;;  %v962_v30 = vadd.s32 536870912, %v2602_v57 }
 0x140   :  { %vm1051_vm0 = vcmp.lt.s32.totalorder %v2588_v44, 2  ;;  %v1060_v1 = vsel %vm1052_vm15, %v1043_v11, %v1059_v52  ;;  %v2627_v49 = vshll.u32 %v1026_v36, 8  ;;  %v2631_v46 = vmul.f32 %v2608_v39, %v2608_v39 }
 0x141   :  { %v2633_v54 = vmul.f32 %v622_v37, %v620_v10  ;;  %v1061_v38 = vsel %vm1051_vm0, %v1058_v22, %v1060_v1  ;;  %v1062_v21 = vsel %vm1050_vm11, %v2593_v9, %v1043_v11  ;;  %v761_v25 = vsub.s32 0, %v2613_v18 }
 0x142   :  { %v1063_v12 = vsel %vm1053_vm12, %v1049_v24, 1326507024  ;;  %v1091_v15 = vand.u32 65535, %v1061_v38  ;;  %v1092_v33 = vshrl.u32 %v1061_v38, 16  ;;  %vm760_vm2 = vcmp.lt.s32.totalorder %v2613_v18, 0 }
 0x143   :  { %v1064_v48 = vsel %vm1052_vm15, %v1046_v29, %v1063_v12  ;;  %v3244_v27 = vand.u32 2147483647, %v2579_v63  ;;  %v1684_v58 = vadd.s32 4294967169, %v1228_v3  ;;  %v2647_v45 = vshrl.u32 %v962_v30, 30 }
 0x144   :  { %v1065_v6 = vsel %vm1051_vm0, %v1062_v21, %v1064_v48  ;;  %v1067_v51 = vand.u32 65535, %v2627_v49  ;;  %v1068_v56 = vshrl.u32 %v2627_v49, 16  ;;  %v2654_v55 = vmul.f32 -0.001358992, %v2631_v46 }
 0x145   :  { %3278 = vst [vmem:[#allocation20_spill] sm:$0xff] %v2647_v45  ;;  %v2657_v36 = vmul.f32 -0.00019511016, %v2631_v46  ;;  %v1069_v14 = vand.u32 65535, %v1065_v6  ;;  %v1070_v29 = vshrl.u32 %v1065_v6, 16  ;;  %v2661_v24 = vsel %vm760_vm2, %v761_v25, %v2613_v18 }
 0x146   :  { %v1094_v22 = vmul.u32 %v1092_v33, %v1067_v51  ;;  %v1095_v52 = vmul.u32 %v1091_v15, %v1068_v56  ;;  %v2665_v30 = vand.u32 8388607, %v3244_v27  ;;  %v1234_v1 = vadd.s32 1, %v1684_v58 }
 0x147   :  { %v1072_v37 = vmul.u32 %v1070_v29, %v1067_v51  ;;  %v1073_v3 = vmul.u32 %v1069_v14, %v1068_v56  ;;  %v964_v38 = vshll.u32 %v2647_v45, 30  ;;  %v1034_v21 = vshrl.u32 %v3263_v8, %v2548_v50 }
 0x148   :  { %v1093_v12 = vmul.u32 %v1091_v15, %v1067_v51  ;;  %v1097_v48 = vshll.u32 %v1094_v22, 16  ;;  %v1071_v6 = vmul.u32 %v1069_v14, %v1067_v51  ;;  %v1074_v23 = vmul.u32 %v1070_v29, %v1068_v56 }
 0x149   :  { %v1075_v25 = vshll.u32 %v1072_v37, 16  ;;  %v1096_v43 = vmul.u32 %v1092_v33, %v1068_v56  ;;  %v1077_v20 = vshll.u32 %v1073_v3, 16  ;;  %v1099_v19 = vshll.u32 %v1095_v52, 16 }
 0x14a   :  { %vm1101_vm4 = vc.u32 %v1093_v12, %v1097_v48  ;;  %v1103_v10 = vadd.s32 %v1097_v48, %v1093_v12  ;;  %vm1235_vm10 = vcmp.gt.s32.totalorder %v1234_v1, 0  ;;  %v1055_v58 = vsel %vm1053_vm12, %v1043_v11, 2102212464 }
 0x14b   :  { %vm1079_vm5 = vc.u32 %v1071_v6, %v1075_v25  ;;  %v1081_v17 = vadd.s32 %v1075_v25, %v1071_v6  ;;  %v1102_v27 = vsel %vm1101_vm4, 1, %v3264_v16  ;;  %v1054_v33 = vsel %vm1050_vm11, %v1034_v21, %v2591_v62 }
 0x14c   :  { %v1080_v50 = vsel %vm1079_vm5, 1, %v3264_v16  ;;  %v1104_v15 = vadd.s32 %v1102_v27, %v1096_v43  ;;  %vm1105_vm3 = vc.u32 %v1103_v10, %v1099_v19  ;;  %v1098_v29 = vshrl.u32 %v1094_v22, 16 }
 0x14d   :  { %v1082_v51 = vadd.s32 %v1080_v50, %v1074_v23  ;;  %vm1083_vm13 = vc.u32 %v1081_v17, %v1077_v20  ;;  %v1106_v56 = vsel %vm1105_vm3, 1, %v3264_v16  ;;  %v1236_v48 = vsel %vm1235_vm10, %v1234_v1, 0 }
 0x14e   :  { %v1084_v14 = vsel %vm1083_vm13, 1, %v3264_v16  ;;  %v1108_v12 = vadd.s32 %v1106_v56, %v1104_v15  ;;  %vm504_vm14 = vcmp.lt.s32.totalorder %v1987_v40, 0  ;;  %v1056_v43 = vsel %vm1052_vm15, %v2593_v9, %v1055_v58 }
 0x14f   :  { %v1076_v11 = vshrl.u32 %v1072_v37, 16  ;;  %v1086_v27 = vadd.s32 %v1084_v14, %v1082_v51  ;;  %v1238_v6 = vand.u32 31, %v1236_v48  ;;  %v763_v62 = vclz %v2661_v24 }
 0x150   :  { %v1100_v23 = vshrl.u32 %v1095_v52, 16  ;;  %v1109_v17 = vadd.s32 %v1108_v12, %v1098_v29  ;;  %v1232_v20 = vor.u32 8388608, %v2665_v30  ;;  %v2686_v21 = vsub.s32 %v2602_v57, %v964_v38 }
 0x151   :  { %v1078_v22 = vshrl.u32 %v1073_v3, 16  ;;  %v1087_v1 = vadd.s32 %v1086_v27, %v1076_v11  ;;  %v2688_v25 = vsub.s32 32, %v1238_v6  ;;  %v1057_v50 = vsel %vm1051_vm0, %v1054_v33, %v1056_v43 }
 0x152   :  { %v2692_v9 = vadd.s32 %v1103_v10, %v1099_v19  ;;  %v1110_v37 = vadd.s32 %v1109_v17, %v1100_v23  ;;  %v1241_v58 = vshll.u32 %v3263_v8, %v1238_v6  ;;  %v1244_v57 = vshll.u32 %v3272_v5, %v1238_v6 }
 0x153   :  { %v2695_v24 = vadd.s32 %v1087_v1, %v1078_v22  ;;  %v1242_v52 = vshrl.u32 %v3272_v5, %v2688_v25  ;;  %v1245_v3 = vshrl.u32 %v3273_v7, %v2688_v25  ;;  %v1248_v44 = vshrl.u32 %v3274_v28, %v2688_v25 }
 0x154   :  { %v1114_v30 = vadd.s32 1, %v1110_v37  ;;  %v1250_v19 = vshll.u32 %v3274_v28, %v1238_v6  ;;  %v1251_v10 = vshrl.u32 %v3275_v60, %v2688_v25  ;;  %v3279_v38 = vand.u32 2147483647, %v1987_v40 }
 0x155   :  { %v3280_v15 = vmov 0  ;;  %v1111_v33 = vmul.u32 %v2627_v49, %v1057_v50  ;;  %vm1113_vm6 = vc.u32 %v2695_v24, %v2692_v9  ;;  %v2716_v51 = vshrl.u32 %v1236_v48, 5 }
 0x156   :  { %vm2709_vm1 = vcmp.le.f32.partialorder %v3279_v38, 0.7853982  ;;  %v1247_v56 = vshll.u32 %v3273_v7, %v1238_v6  ;;  %v1115_v14 = vsel %vm1113_vm6, %v1114_v30, %v1110_v37  ;;  %v2719_v29 = vor.u32 %v1242_v52, %v1241_v58 }
 0x157   :  { %v3281_v15 = vsel %vm2709_vm1, 4294967295, %v3280_v15  ;;  %v2721_v12 = vor.u32 %v1245_v3, %v1244_v57  ;;  %v1252_v43 = vor.u32 %v1251_v10, %v1250_v19  ;;  %v1116_v11 = vadd.s32 %v1115_v14, %v1111_v33  ;;  %v1217_v33 = vpop.f32.mrf.mxu3 }
 0x158   :  { %3282 = vst [vmem:[#allocation21_spill] sm:$0xff] %v3281_v15  ;;  %v2723_v27 = vor.u32 %v1248_v44, %v1247_v56  ;;  %v1253_v23 = vshll.u32 %v3275_v60, %v1238_v6  ;;  %v1254_v49 = vshrl.u32 %v3276_v32, %v2688_v25  ;;  %vm288_vm8 = vcmp.eq.s32.totalorder %v2516_v42, 0 }
 0x159   :  { %v3283_v48 = vxor.u32 2147483648, %v2633_v54  ;;  %v1672_v22 = vadd.s32 4294967294, %v763_v62  ;;  %vm966_vm9 = vcmp.lt.s32.totalorder %v2686_v21, 0  ;;  %v967_v1 = vsub.s32 0, %v2686_v21 }
 0x15a   :  { %v1117_v50 = vadd.s32 536870912, %v1116_v11  ;;  %v1255_v37 = vor.u32 %v1254_v49, %v1253_v23  ;;  %vm1256_vm11 = vcmp.lt.s32.totalorder %v2716_v51, 1  ;;  %vm1259_vm12 = vcmp.lt.s32.totalorder %v2716_v51, 4 }
 0x15b   :  { %v625_v17 = vsel %vm504_vm14, %v3283_v48, %v2633_v54  ;;  %vm1258_vm15 = vcmp.lt.s32.totalorder %v2716_v51, 3  ;;  %v1264_v6 = vsel %vm1256_vm11, %v2719_v29, %v2721_v12  ;;  %v1265_v54 = vsel %vm1259_vm12, %v1252_v43, 920167782 }
 0x15c   :  { %v2745_v62 = vshll.u32 %v1232_v20, 8  ;;  %v2747_v58 = vshrl.u32 %v1117_v50, 30  ;;  %vm1257_vm0 = vcmp.lt.s32.totalorder %v2716_v51, 2  ;;  %v1266_v52 = vsel %vm1258_vm15, %v2723_v27, %v1265_v54 }
 0x15d   :  { %v1268_v57 = vsel %vm1256_vm11, %v2721_v12, %v2723_v27  ;;  %v426_v3 = vadd.f32 0.041655596, %v2654_v55  ;;  %v968_v30 = vsel %vm966_vm9, %v967_v1, %v2686_v21  ;;  %v1267_v20 = vsel %vm1257_vm0, %v1264_v6, %v1266_v52 }
 0x15e   :  { %3284 = vst [vmem:[#allocation22_spill] sm:$0xff] %v2747_v58  ;;  %v1269_v44 = vsel %vm1259_vm12, %v1255_v37, 1326507024  ;;  %v433_v19 = vadd.f32 0.008332121, %v2657_v36  ;;  %vm1673_vm2 = vcmp.lt.s32.totalorder %v1672_v22, 0  ;;  %v2770_v55 = vsel %vm2709_vm1, %v1987_v40, %v625_v17 }
 0x15f   :  { %v1119_v10 = vshll.u32 %v2747_v58, 30  ;;  %v1270_v38 = vsel %vm1258_vm15, %v1252_v43, %v1269_v44  ;;  %3285 = vst [vmem:[#allocation23_spill] sm:$0xff] %v2770_v55  ;;  %v1273_v14 = vand.u32 65535, %v2745_v62  ;;  %v1298_v23 = vshrl.u32 %v1267_v20, 16 }
 0x160   :  { %v1271_v56 = vsel %vm1257_vm0, %v1268_v57, %v1270_v38  ;;  %v969_v49 = vclz %v968_v30  ;;  %v1297_v1 = vand.u32 65535, %v1267_v20  ;;  %v2775_v50 = vsel %vm1673_vm2, 0, %v1672_v22 }
 0x161   :  { %v1275_v36 = vand.u32 65535, %v1271_v56  ;;  %v1276_v48 = vshrl.u32 %v1271_v56, 16  ;;  %v1274_v43 = vshrl.u32 %v2745_v62, 16  ;;  %v1300_v37 = vmul.u32 %v1298_v23, %v1273_v14 }
 0x162   :  { %v1221_v6 = vmul.f32 2.0, %v1217_v33  ;;  %v3286_v54 = vxor.u32 2147483648, %v2598_v2  ;;  %v2786_v52 = vmul.f32 %v426_v3, %v2631_v46  ;;  %v2789_v57 = vmul.f32 %v433_v19, %v2631_v46 }
 0x163   :  { %v2791_v30 = vsub.s32 %v1116_v11, %v1119_v10  ;;  %v2795_v22 = vmul.f32 %v2770_v55, %v2770_v55  ;;  %v751_v20 = vadd.s32 %v2490_v0, %v2469_v59  ;;  %v1278_v44 = vmul.u32 %v1276_v48, %v1273_v14 }
 0x164   :  { %v2783_v17 = vsel %vm288_vm8, %v2550_v61, %v3286_v54  ;;  %v1279_v38 = vmul.u32 %v1275_v36, %v1274_v43  ;;  %v771_v33 = vsub.s32 4294967266, %v2775_v50  ;;  %v1677_v56 = vadd.s32 4294967294, %v969_v49 }
 0x165   :  { %v1301_v54 = vmul.u32 %v1297_v1, %v1274_v43  ;;  %v1303_v3 = vshll.u32 %v1300_v37, 16  ;;  %v1277_v58 = vmul.u32 %v1275_v36, %v1273_v14  ;;  %v1281_v45 = vshll.u32 %v1278_v44, 16 }
 0x166   :  { %v1299_v19 = vmul.u32 %v1297_v1, %v1273_v14  ;;  %v2801_v11 = vadd.f32 %v1221_v6, %v1908_v13  ;;  %vm1121_vm4 = vcmp.lt.s32.totalorder %v2791_v30, 0  ;;  %v1122_v10 = vsub.s32 0, %v2791_v30 }
 0x167   :  { %v1280_v4 = vmul.u32 %v1276_v48, %v1274_v43  ;;  %v1302_v55 = vmul.u32 %v1298_v23, %v1274_v43  ;;  %v1283_v59 = vshll.u32 %v1279_v38, 16  ;;  %vm1285_vm5 = vc.u32 %v1277_v58, %v1281_v45 }
 0x168   :  { %v1287_v0 = vadd.s32 %v1281_v45, %v1277_v58  ;;  %vm1307_vm10 = vc.u32 %v1299_v19, %v1303_v3  ;;  %v1286_v49 = vsel %vm1285_vm5, 1, %v3264_v16  ;;  %v1305_v39 = vshll.u32 %v1301_v54, 16 }
 0x169   :  { %v1308_v36 = vsel %vm1307_vm10, 1, %v3264_v16  ;;  %v1309_v15 = vadd.s32 %v1303_v3, %v1299_v19  ;;  %vm1678_vm3 = vcmp.lt.s32.totalorder %v1677_v56, 0  ;;  %v1288_v14 = vadd.s32 %v1286_v49, %v1280_v4 }
 0x16a   :  { %vm1289_vm13 = vc.u32 %v1287_v0, %v1283_v59  ;;  %v1310_v13 = vadd.s32 %v1308_v36, %v1302_v55  ;;  %v767_v1 = vsub.s32 32, %v2775_v50  ;;  %v772_v6 = vadd.s32 127, %v771_v33 }
 0x16b   :  { %v1290_v48 = vsel %vm1289_vm13, 1, %v3264_v16  ;;  %vm1311_vm6 = vc.u32 %v1309_v15, %v1305_v39  ;;  %v1123_v45 = vsel %vm1121_vm4, %v1122_v10, %v2791_v30  ;;  %v1261_v58 = vsel %vm1259_vm12, %v2723_v27, 2102212464 }
 0x16c   :  { %v1282_v23 = vshrl.u32 %v1278_v44, 16  ;;  %v1292_v43 = vadd.s32 %v1290_v48, %v1288_v14  ;;  %v972_v3 = vsel %vm1678_vm3, 0, %v1677_v56  ;;  %v1240_v4 = vshrl.u32 %v3263_v8, %v2688_v25 }
 0x16d   :  { %v1312_v55 = vsel %vm1311_vm6, 1, %v3264_v16  ;;  %v1382_v33 = vand.u32 2139095040, %v2801_v11  ;;  %v1284_v19 = vshrl.u32 %v1279_v38, 16  ;;  %v1304_v0 = vshrl.u32 %v1300_v37, 16 }
 0x16e   :  { %v1293_v59 = vadd.s32 %v1292_v43, %v1282_v23  ;;  %v1314_v49 = vadd.s32 %v1312_v55, %v1310_v13  ;;  %v1124_v36 = vclz %v1123_v45  ;;  %v1260_v10 = vsel %vm1256_vm11, %v1240_v4, %v2719_v29 }
 0x16f   :  { %v1262_v27 = vsel %vm1258_vm15, %v2721_v12, %v1261_v58  ;;  %v1383_v44 = vshrl.u32 %v1382_v33, 23  ;;  %v638_v25 = vmul.f32 -0.00019511016, %v2795_v22  ;;  %v1306_v14 = vshrl.u32 %v1301_v54, 16 }
 0x170   :  { %v2826_v56 = vadd.s32 %v1293_v59, %v1284_v19  ;;  %v1315_v48 = vadd.s32 %v1314_v49, %v1304_v0  ;;  %v769_v38 = vshrl.u32 %v751_v20, %v767_v1  ;;  %v773_v23 = vshll.u32 %v772_v6, 23 }
 0x171   :  { %v2828_v37 = vadd.s32 %v1309_v15, %v1305_v39  ;;  %v1687_v13 = vadd.s32 4294967169, %v1383_v44  ;;  %v973_v45 = vsub.s32 32, %v972_v3  ;;  %v977_v43 = vsub.s32 4294967266, %v972_v3 }
 0x172   :  { %v1263_v29 = vsel %vm1257_vm0, %v1260_v10, %v1262_v27  ;;  %v1316_v4 = vadd.s32 %v1315_v48, %v1306_v14  ;;  %v768_v12 = vshll.u32 %v2613_v18, %v2775_v50  ;;  %v1680_v58 = vadd.s32 4294967294, %v1124_v36 }
 0x173   :  { %vm1319_vm8 = vc.u32 %v2826_v56, %v2828_v37  ;;  %v1389_v54 = vadd.s32 1, %v1687_v13  ;;  %v631_v20 = vmul.f32 -0.001358992, %v2795_v22  ;;  %v639_v1 = vadd.f32 0.008332121, %v638_v25 }
 0x174   :  { %v957_v39 = vadd.s32 %v2562_v35, %v2546_v47  ;;  %v1320_v15 = vadd.s32 1, %v1316_v4  ;;  %v770_v6 = vor.u32 %v769_v38, %v768_v12  ;;  %v774_v55 = vor.u32 4788187, %v773_v23 }
 0x175   :  { %v1317_v51 = vmul.u32 %v2745_v62, %v1263_v29  ;;  %vm1390_vm9 = vcmp.gt.s32.totalorder %v1389_v54, 0  ;;  %v978_v19 = vadd.s32 127, %v977_v43  ;;  %vm1681_vm11 = vcmp.lt.s32.totalorder %v1680_v58, 0 }
 0x176   :  { %v975_v33 = vshrl.u32 %v957_v39, %v973_v45  ;;  %v1321_v18 = vsel %vm1319_vm8, %v1320_v15, %v1316_v4  ;;  %v1391_v50 = vsel %vm1390_vm9, %v1389_v54, 0  ;;  %v1379_v0 = vand.u32 2147483647, %v2801_v11 }
 0x177   :  { %v1322_v59 = vadd.s32 %v1321_v18, %v1317_v51  ;;  %v1393_v49 = vand.u32 31, %v1391_v50  ;;  %v2842_v36 = vadd.f32 -0.16666654, %v2789_v57  ;;  %v626_v47 = vsub.s32 4, %v2322_v26 }
 0x178   :  { %v2845_v35 = vadd.f32 0.041655596, %v631_v20  ;;  %v974_v10 = vshll.u32 %v2686_v21, %v972_v3  ;;  %v2849_v62 = vmul.f32 %v639_v1, %v2795_v22  ;;  %v777_v27 = vcvt.s32.f32 %v770_v6 }
 0x179   :  { %v1323_v44 = vadd.s32 536870912, %v1322_v59  ;;  %v2851_v25 = vsub.s32 32, %v1393_v49  ;;  %v775_v14 = vand.u32 2147483647, %v774_v55  ;;  %v979_v38 = vshll.u32 %v978_v19, 23 }
 0x17a   :  { %v976_v48 = vor.u32 %v975_v33, %v974_v10  ;;  %v2853_v23 = vsel %vm1681_vm11, 0, %v1680_v58  ;;  %v1386_v13 = vand.u32 8388607, %v1379_v0  ;;  %v1396_v45 = vshll.u32 %v3263_v8, %v1393_v49 }
 0x17b   :  { %v2855_v57 = vshrl.u32 %v1323_v44, 30  ;;  %v1397_v21 = vshrl.u32 %v3272_v5, %v2851_v25  ;;  %v1399_v3 = vshll.u32 %v3272_v5, %v1393_v49  ;;  %v1400_v43 = vshrl.u32 %v3273_v7, %v2851_v25 }
 0x17c   :  { %v1403_v29 = vshrl.u32 %v3274_v28, %v2851_v25  ;;  %v1406_v4 = vshrl.u32 %v3275_v60, %v2851_v25  ;;  %v2870_v58 = vshrl.u32 %v1391_v50, 5  ;;  %v1405_v54 = vshll.u32 %v3274_v28, %v1393_v49 }
 0x17d   :  { %v1325_v12 = vshll.u32 %v2855_v57, 30  ;;  %v1409_v20 = vshrl.u32 %v3276_v32, %v2851_v25  ;;  %v980_v1 = vor.u32 4788187, %v979_v38  ;;  %v2875_v5 = vor.u32 %v1397_v21, %v1396_v45 }
 0x17e   :  { %v2877_v39 = vor.u32 %v1400_v43, %v1399_v3  ;;  %v1402_v15 = vshll.u32 %v3273_v7, %v1393_v49  ;;  %v1387_v55 = vor.u32 8388608, %v1386_v13  ;;  %v1407_v51 = vor.u32 %v1406_v4, %v1405_v54 }
 0x17f   :  { %v1326_v6 = vsub.s32 %v1322_v59, %v1325_v12  ;;  %v1408_v33 = vshll.u32 %v3275_v60, %v1393_v49  ;;  %v2881_v19 = vmul.f32 %v777_v27, %v775_v14  ;;  %v983_v18 = vcvt.s32.f32 %v976_v48 }
 0x180   :  { %v1132_v28 = vsub.s32 4294967266, %v2853_v23  ;;  %v2884_v50 = vor.u32 %v1403_v29, %v1402_v15  ;;  %vm1411_vm15 = vcmp.lt.s32.totalorder %v2870_v58, 1  ;;  %v981_v44 = vand.u32 2147483647, %v980_v1 }
 0x181   :  { %vm1327_vm12 = vcmp.lt.s32.totalorder %v1326_v6, 0  ;;  %v1328_v32 = vsub.s32 0, %v1326_v6  ;;  %v1410_v10 = vor.u32 %v1409_v20, %v1408_v33  ;;  %v1128_v7 = vsub.s32 32, %v2853_v23 }
 0x182   :  { %vm1414_vm0 = vcmp.lt.s32.totalorder %v2870_v58, 4  ;;  %v1419_v60 = vsel %vm1411_vm15, %v2875_v5, %v2877_v39  ;;  %vm1413_vm2 = vcmp.lt.s32.totalorder %v2870_v58, 3  ;;  %v2896_v27 = vshll.u32 %v1387_v55, 8 }
 0x183   :  { %v1329_v59 = vsel %vm1327_vm12, %v1328_v32, %v1326_v6  ;;  %v1420_v49 = vsel %vm1414_vm0, %v1407_v51, 920167782  ;;  %v1112_v14 = vadd.s32 %v2692_v9, %v2695_v24  ;;  %vm1412_vm4 = vcmp.lt.s32.totalorder %v2870_v58, 2 }
 0x184   :  { %v1330_v48 = vclz %v1329_v59  ;;  %v1421_v38 = vsel %vm1413_vm2, %v2884_v50, %v1420_v49  ;;  %v1133_v13 = vadd.s32 127, %v1132_v28  ;;  %v1423_v21 = vsel %vm1411_vm15, %v2877_v39, %v2884_v50 }
 0x185   :  { %v1422_v45 = vsel %vm1412_vm4, %v1419_v60, %v1421_v38  ;;  %v1424_v3 = vsel %vm1414_vm0, %v1410_v10, 1326507024  ;;  %v779_v9 = vxor.u32 2147483648, %v2881_v19  ;;  %v2913_v24 = vmul.f32 %v983_v18, %v981_v44 }
 0x186   :  { %v1685_v43 = vadd.s32 4294967294, %v1330_v48  ;;  %v1425_v29 = vsel %vm1413_vm2, %v1407_v51, %v1424_v3  ;;  %v1130_v4 = vshrl.u32 %v1112_v14, %v1128_v7  ;;  %v1428_v54 = vand.u32 65535, %v2896_v27 }
 0x187   :  { %v1426_v12 = vsel %vm1412_vm4, %v1423_v21, %v1425_v29  ;;  %v1453_v20 = vshrl.u32 %v1422_v45, 16  ;;  %v1452_v55 = vand.u32 65535, %v1422_v45  ;;  %v1129_v33 = vshll.u32 %v2791_v30, %v2853_v23 }
 0x188   :  { %vm1686_vm5 = vcmp.lt.s32.totalorder %v1685_v43, 0  ;;  %v1430_v1 = vand.u32 65535, %v1426_v12  ;;  %v1431_v15 = vshrl.u32 %v1426_v12, 16  ;;  %v1134_v18 = vshll.u32 %v1133_v13, 23 }
 0x189   :  { %v1333_v28 = vsel %vm1686_vm5, 0, %v1685_v43  ;;  %v1429_v32 = vshrl.u32 %v2896_v27, 16  ;;  %v1318_v51 = vadd.s32 %v2828_v37, %v2826_v56  ;;  %v1455_v7 = vmul.u32 %v1453_v20, %v1428_v54 }
 0x18a   :  { %v1334_v10 = vsub.s32 32, %v1333_v28  ;;  %v1338_v44 = vsub.s32 4294967266, %v1333_v28  ;;  %v985_v60 = vxor.u32 2147483648, %v2913_v24  ;;  %v1131_v59 = vor.u32 %v1130_v4, %v1129_v33 }
 0x18b   :  { %v1433_v49 = vmul.u32 %v1431_v15, %v1428_v54  ;;  %v1434_v14 = vmul.u32 %v1430_v1, %v1429_v32  ;;  %v1335_v48 = vshll.u32 %v1326_v6, %v1333_v28  ;;  %v1456_v21 = vmul.u32 %v1452_v55, %v1429_v32 }
 0x18c   :  { %v1336_v38 = vshrl.u32 %v1318_v51, %v1334_v10  ;;  %v1339_v45 = vadd.s32 127, %v1338_v44  ;;  %v1135_v30 = vor.u32 4788187, %v1134_v18  ;;  %v1432_v23 = vmul.u32 %v1430_v1, %v1428_v54  ;;  %v3287_v1 = vld [vmem:[#allocation17_spill] sm:$0xff] }
 0x18d   :  { %v1436_v13 = vshll.u32 %v1433_v49, 16  ;;  %v1454_v3 = vmul.u32 %v1452_v55, %v1428_v54  ;;  %vm865_vm10 = vcmp.lt.s32.totalorder %v2206_v53, 0  ;;  %v1435_v37 = vmul.u32 %v1431_v15, %v1429_v32 }
 0x18e   :  { %v1337_v43 = vor.u32 %v1336_v38, %v1335_v48  ;;  %v1340_v56 = vshll.u32 %v1339_v45, 23  ;;  %v1458_v29 = vshll.u32 %v1455_v7, 16  ;;  %vm1226_vm3 = vcmp.lt.s32.totalorder %v2579_v63, 0 }
 0x18f   :  { %v1438_v12 = vshll.u32 %v1434_v14, 16  ;;  %vm1440_vm13 = vc.u32 %v1432_v23, %v1436_v13  ;;  %v1442_v4 = vadd.s32 %v1436_v13, %v1432_v23  ;;  %v1457_v33 = vmul.u32 %v1453_v20, %v1429_v32 }
 0x190   :  { %v1341_v6 = vor.u32 4788187, %v1340_v56  ;;  %v1441_v28 = vsel %vm1440_vm13, 1, %v3264_v16  ;;  %v1460_v51 = vshll.u32 %v1456_v21, 16  ;;  %vm1462_vm6 = vc.u32 %v1454_v3, %v1458_v29 }
 0x191   :  { %vm659_vm8 = vcmp.lt.s32.totalorder %v3287_v1, 0  ;;  %v1443_v54 = vadd.s32 %v1441_v28, %v1435_v37  ;;  %vm1444_vm9 = vc.u32 %v1442_v4, %v1438_v12  ;;  %v1463_v55 = vsel %vm1462_vm6, 1, %v3264_v16 }
 0x192   :  { %v1464_v18 = vadd.s32 %v1458_v29, %v1454_v3  ;;  %v1342_v15 = vand.u32 2147483647, %v1341_v6  ;;  %v1344_v10 = vcvt.s32.f32 %v1337_v43  ;;  %v1445_v44 = vsel %vm1444_vm9, 1, %v3264_v16 }
 0x193   :  { %v1465_v48 = vadd.s32 %v1463_v55, %v1457_v33  ;;  %v1416_v20 = vsel %vm1414_vm0, %v2884_v50, 2102212464  ;;  %v1437_v32 = vshrl.u32 %v1433_v49, 16  ;;  %v1447_v38 = vadd.s32 %v1445_v44, %v1443_v54 }
 0x194   :  { %vm1466_vm11 = vc.u32 %v1464_v18, %v1460_v51  ;;  %v3288_v45 = vand.u32 2147483647, %v3287_v1  ;;  %v1136_v13 = vand.u32 2147483647, %v1135_v30  ;;  %v1345_v3 = vmul.f32 %v1344_v10, %v1342_v15 }
 0x195   :  { %v1395_v43 = vshrl.u32 %v3263_v8, %v2851_v25  ;;  %v1467_v56 = vsel %vm1466_vm11, 1, %v3264_v16  ;;  %vm291_vm5 = vcmp.eq.s32.totalorder %v2516_v42, 2  ;;  %v1439_v37 = vshrl.u32 %v1434_v14, 16 }
 0x196   :  { %vm2937_vm12 = vcmp.le.f32.partialorder %v3288_v45, 0.7853982  ;;  %v1448_v50 = vadd.s32 %v1447_v38, %v1437_v32  ;;  %v1459_v49 = vshrl.u32 %v1455_v7, 16  ;;  %v1469_v29 = vadd.s32 %v1467_v56, %v1465_v48 }
 0x197   :  { %v1138_v12 = vcvt.s32.f32 %v1131_v59  ;;  %v1346_v4 = vxor.u32 2147483648, %v1345_v3  ;;  %v1415_v33 = vsel %vm1411_vm15, %v1395_v43, %v2875_v5  ;;  %v1417_v30 = vsel %vm1413_vm2, %v2877_v39, %v1416_v20 }
 0x198   :  { %v986_v8 = vsel %vm865_vm10, %v985_v60, %v2913_v24  ;;  %v2954_v16 = vadd.s32 %v1448_v50, %v1439_v37  ;;  %v1461_v25 = vshrl.u32 %v1456_v21, 16  ;;  %v1470_v14 = vadd.s32 %v1469_v29, %v1459_v49 }
 0x199   :  { %v633_v7 = vmul.f32 %v2845_v35, %v2795_v22  ;;  %v1139_v59 = vmul.f32 %v1138_v12, %v1136_v13  ;;  %v1347_v6 = vsel %vm1226_vm3, %v1346_v4, %v1345_v3  ;;  %v2960_v5 = vadd.s32 %v1464_v18, %v1460_v51  ;;  %v3303_v12 = vld [vmem:[#allocation15_spill] sm:$0xff] }
 0x19a   :  { %v641_v28 = vadd.f32 -0.16666654, %v2849_v62  ;;  %v3291_v39 = vand.u32 2147483647, %v2206_v53  ;;  %v1418_v24 = vsel %vm1412_vm4, %v1415_v33, %v1417_v30  ;;  %v1471_v60 = vadd.s32 %v1470_v14, %v1461_v25 }
 0x19b   :  { %v780_v35 = vsel %vm659_vm8, %v779_v9, %v2881_v19  ;;  %v3294_v21 = vand.u32 2147483647, %v2579_v63  ;;  %vm1474_vm2 = vc.u32 %v2954_v16, %v2960_v5  ;;  %v428_v58 = vadd.f32 -0.4999988, %v2786_v52 }
 0x19c   :  { %vm2965_vm15 = vcmp.le.f32.partialorder %v3291_v39, 0.7853982  ;;  %v436_v55 = vmul.f32 %v2842_v36, %v2631_v46  ;;  %v1475_v9 = vadd.s32 1, %v1471_v60  ;;  %v627_v18 = vsel %vm504_vm14, %v626_v47, %v2322_v26 }
 0x19d   :  { %v2979_v62 = vsel %vm2965_vm15, %v2206_v53, %v986_v8  ;;  %vm2983_vm0 = vcmp.le.f32.partialorder %v3294_v21, 0.7853982  ;;  %v634_v15 = vadd.f32 -0.4999988, %v633_v7  ;;  %v1140_v10 = vxor.u32 2147483648, %v1139_v59  ;;  %v3304_v7 = vld [vmem:[#allocation19_spill] sm:$0xff] }
 0x19e   :  { %v2995_v19 = vsel %vm2983_vm0, %v2579_v63, %v1347_v6  ;;  %v1472_v44 = vmul.u32 %v2896_v27, %v1418_v24  ;;  %v642_v52 = vmul.f32 %v641_v28, %v2795_v22  ;;  %v3007_v36 = vsel %vm2937_vm12, %v3287_v1, %v780_v35  ;;  %v3305_v28 = vld [vmem:[#allocation23_spill] sm:$0xff] }
 0x19f   :  { %v3011_v48 = vmul.f32 %v2979_v62, %v2979_v62  ;;  %v1476_v20 = vsel %vm1474_vm2, %v1475_v9, %v1471_v60  ;;  %vm287_vm4 = vcmp.lt.s32.totalorder %v2516_v42, 2  ;;  %v3297_v26 = vxor.u32 2147483648, %v2550_v61  ;;  %v3306_v9 = vld [vmem:[#allocation18_spill] sm:$0xff] }
 0x1a0   :  { %v3021_v27 = vmul.f32 %v2995_v19, %v2995_v19  ;;  %v1477_v32 = vadd.s32 %v1476_v20, %v1472_v44  ;;  %v429_v45 = vmul.f32 %v428_v58, %v2631_v46  ;;  %v3298_v13 = vsel %vm2510_vm7, 0, %v2523_v41 }
 0x1a1   :  { %v293_v47 = vsel %vm291_vm5, %v3297_v26, %v2598_v2  ;;  %v440_v3 = vadd.s32 3, %v3298_v13  ;;  %vm1020_vm14 = vcmp.lt.s32.totalorder %v2479_v34, 0  ;;  %v629_v42 = vsel %vm2709_vm1, 0, %v627_v18 }
 0x1a2   :  { %v294_v38 = vsel %vm287_vm4, %v2783_v17, %v293_v47  ;;  %v3034_v2 = vmul.f32 %v3007_v36, %v3007_v36  ;;  %v1141_v43 = vsel %vm1020_vm14, %v1140_v10, %v1139_v59  ;;  %v1478_v17 = vadd.s32 536870912, %v1477_v32 }
 0x1a3   :  { %v437_v56 = vadd.f32 1.0, %v436_v55  ;;  %v635_v46 = vmul.f32 %v634_v15, %v2795_v22  ;;  %v643_v31 = vadd.f32 1.0, %v642_v52  ;;  %v999_v41 = vmul.f32 -0.00019511016, %v3011_v48  ;;  %v3307_v15 = vld [vmem:[#allocation20_spill] sm:$0xff] }
 0x1a4   :  { %v3300_v37 = vand.u32 2147483647, %v2479_v34  ;;  %v1360_v49 = vmul.f32 -0.00019511016, %v3021_v27  ;;  %v3047_v29 = vshrl.u32 %v1478_v17, 30  ;;  %vm284_vm1 = vweird.f32 %v3303_v12 }
 0x1a5   :  { %v3050_v4 = vand.u32 3, %v440_v3  ;;  %v646_v33 = vadd.s32 3, %v629_v42  ;;  %v3057_v30 = vsel %vm284_vm1, nan, %v294_v38  ;;  %v3059_v8 = vadd.f32 1.0, %v429_v45 }
 0x1a6   :  { %vm3042_vm7 = vcmp.le.f32.partialorder %v3300_v37, 0.7853982  ;;  %v793_v25 = vmul.f32 -0.00019511016, %v3034_v2  ;;  %v1480_v14 = vshll.u32 %v3047_v29, 30  ;;  %v3064_v59 = vmul.f32 %v437_v56, %v3304_v7 }
 0x1a7   :  { %v3055_v22 = vsel %vm3042_vm7, %v2479_v34, %v1141_v43  ;;  %v636_v6 = vadd.f32 1.0, %v635_v46  ;;  %v644_v39 = vmul.f32 %v643_v31, %v3305_v28  ;;  %v1000_v24 = vadd.f32 0.008332121, %v999_v41 }
 0x1a8   :  { %v786_v60 = vmul.f32 -0.001358992, %v3034_v2  ;;  %v3070_v35 = vmul.f32 %v3055_v22, %v3055_v22  ;;  %v1361_v21 = vadd.f32 0.008332121, %v1360_v49  ;;  %v1481_v58 = vsub.s32 %v1477_v32, %v1480_v14 }
 0x1a9   :  { %v647_v55 = vand.u32 3, %v646_v33  ;;  %v781_v18 = vsub.s32 4, %v3306_v9  ;;  %v987_v10 = vsub.s32 4, %v3307_v15  ;;  %v992_v44 = vmul.f32 -0.001358992, %v3011_v48 }
 0x1aa   :  { %v794_v52 = vadd.f32 0.008332121, %v793_v25  ;;  %vm1482_vm13 = vcmp.lt.s32.totalorder %v1481_v58, 0  ;;  %v1483_v20 = vsub.s32 0, %v1481_v58  ;;  %v1353_v26 = vmul.f32 -0.001358992, %v3021_v27 }
 0x1ab   :  { %v447_v47 = vxor.u32 2147483648, %v3059_v8  ;;  %v650_v38 = vxor.u32 2147483648, %v644_v39  ;;  %v653_v45 = vxor.u32 2147483648, %v636_v6  ;;  %v1001_v13 = vmul.f32 %v1000_v24, %v3011_v48 }
 0x1ac   :  { %v787_v3 = vadd.f32 0.041655596, %v786_v60  ;;  %v1154_v32 = vmul.f32 -0.00019511016, %v3070_v35  ;;  %v1362_v61 = vmul.f32 %v1361_v21, %v3021_v27  ;;  %v1484_v42 = vsel %vm1482_vm13, %v1483_v20, %v1481_v58 }
 0x1ad   :  { %vm649_vm6 = vcmp.eq.s32.totalorder %v647_v55, 0  ;;  %vm652_vm9 = vcmp.eq.s32.totalorder %v647_v55, 2  ;;  %v1485_v43 = vclz %v1484_v42  ;;  %v993_v17 = vadd.f32 0.041655596, %v992_v44 }
 0x1ae   :  { %vm648_vm11 = vcmp.lt.s32.totalorder %v647_v55, 2  ;;  %v782_v56 = vsel %vm659_vm8, %v781_v18, %v3306_v9  ;;  %v795_v46 = vmul.f32 %v794_v52, %v3034_v2  ;;  %v988_v31 = vsel %vm865_vm10, %v987_v10, %v3307_v15 }
 0x1af   :  { %v1354_v41 = vadd.f32 0.041655596, %v1353_v26  ;;  %v651_v37 = vsel %vm649_vm6, %v636_v6, %v650_v38  ;;  %v654_v49 = vsel %vm652_vm9, %v653_v45, %v644_v39  ;;  %v1002_v12 = vadd.f32 -0.16666654, %v1001_v13 }
 0x1b0   :  { %v1688_v33 = vadd.s32 4294967294, %v1485_v43  ;;  %v788_v25 = vmul.f32 %v787_v3, %v3034_v2  ;;  %v1155_v14 = vadd.f32 0.008332121, %v1154_v32  ;;  %v1348_v7 = vsub.s32 4, %v2855_v57 }
 0x1b1   :  { %v1363_v28 = vadd.f32 -0.16666654, %v1362_v61  ;;  %v784_v24 = vsel %vm2937_vm12, 0, %v782_v56  ;;  %v990_v60 = vsel %vm2965_vm15, 0, %v988_v31  ;;  %v994_v21 = vmul.f32 %v993_v17, %v3011_v48  ;;  %v3308_v61 = vld [vmem:[#allocation22_spill] sm:$0xff] }
 0x1b2   :  { %vm1689_vm8 = vcmp.lt.s32.totalorder %v1688_v33, 0  ;;  %v796_v9 = vadd.f32 -0.16666654, %v795_v46  ;;  %v1147_v39 = vmul.f32 -0.001358992, %v3070_v35  ;;  %v1355_v18 = vmul.f32 %v1354_v41, %v3021_v27 }
 0x1b3   :  { %v1488_v6 = vsel %vm1689_vm8, 0, %v1688_v33  ;;  %vm645_vm10 = vweird.f32 %v1987_v40  ;;  %v1003_v15 = vmul.f32 %v1002_v12, %v3011_v48  ;;  %v1473_v23 = vadd.s32 %v2960_v5, %v2954_v16 }
 0x1b4   :  { %v1489_v10 = vsub.s32 32, %v1488_v6  ;;  %v1493_v44 = vsub.s32 4294967266, %v1488_v6  ;;  %v789_v54 = vadd.f32 -0.4999988, %v788_v25  ;;  %v1156_v52 = vmul.f32 %v1155_v14, %v3070_v35 }
 0x1b5   :  { %v1349_v20 = vsel %vm1226_vm3, %v1348_v7, %v2855_v57  ;;  %v1364_v26 = vmul.f32 %v1363_v28, %v3021_v27  ;;  %v1490_v38 = vshll.u32 %v1481_v58, %v1488_v6  ;;  %v995_v3 = vadd.f32 -0.4999988, %v994_v21 }
 0x1b6   :  { %v1491_v45 = vshrl.u32 %v1473_v23, %v1489_v10  ;;  %v1494_v13 = vadd.s32 127, %v1493_v44  ;;  %v797_v32 = vmul.f32 %v796_v9, %v3034_v2  ;;  %v1142_v42 = vsub.s32 4, %v3308_v61 }
 0x1b7   :  { %v1148_v16 = vadd.f32 0.041655596, %v1147_v39  ;;  %v1356_v5 = vadd.f32 -0.4999988, %v1355_v18  ;;  %v655_v43 = vsel %vm648_vm11, %v651_v37, %v654_v49  ;;  %v1004_v17 = vadd.f32 1.0, %v1003_v15 }
 0x1b8   :  { %v1492_v56 = vor.u32 %v1491_v45, %v1490_v38  ;;  %v1495_v46 = vshll.u32 %v1494_v13, 23  ;;  %v801_v31 = vadd.s32 3, %v784_v24  ;;  %v1157_v41 = vadd.f32 -0.16666654, %v1156_v52 }
 0x1b9   :  { %v1351_v57 = vsel %vm2983_vm0, 0, %v1349_v20  ;;  %v1365_v58 = vadd.f32 1.0, %v1364_v26  ;;  %v790_v12 = vmul.f32 %v789_v54, %v3034_v2  ;;  %v1007_v33 = vadd.s32 3, %v990_v60  ;;  %v1538_v26 = vld [vmem:[%s3216_s3] sm:$0x3]  ;;  %s1855_s3 = smov [#allocation10]  }
 0x1ba   :  { %v1496_v25 = vor.u32 4788187, %v1495_v46  ;;  %v996_v14 = vmul.f32 %v995_v3, %v3011_v48  ;;  %v798_v7 = vadd.f32 1.0, %v797_v32  ;;  %v1143_v55 = vsel %vm1020_vm14, %v1142_v42, %v3308_v61  ;;  %s1644_s15 = sshll.u32 %s1855_s3, 4  ;;  %s1645_s15 = int_to_ptr.vmem [resolvable:$true] %s1644_s15 }
 0x1bb   :  { %v1149_v37 = vmul.f32 %v1148_v16, %v3070_v35  ;;  %v1357_v49 = vmul.f32 %v1356_v5, %v3021_v27  ;;  %v1005_v28 = vmul.f32 %v1004_v17, %v2979_v62  ;;  %v1368_v51 = vadd.s32 3, %v1351_v57 }
 0x1bc   :  { %v1497_v24 = vand.u32 2147483647, %v1496_v25  ;;  %v1499_v21 = vcvt.s32.f32 %v1492_v56  ;;  %v444_v2 = vxor.u32 2147483648, %v3064_v59  ;;  %v3121_v60 = vsel %vm645_vm10, nan, %v655_v43 }
 0x1bd   :  { %v1158_v48 = vmul.f32 %v1157_v41, %v3070_v35  ;;  %v1366_v9 = vmul.f32 %v1365_v58, %v2995_v19  ;;  %v1008_v6 = vand.u32 3, %v1007_v33  ;;  %v1145_v39 = vsel %vm3042_vm7, 0, %v1143_v55 }
 0x1be   :  { %v1500_v27 = vmul.f32 %v1499_v21, %v1497_v24  ;;  %v997_v18 = vadd.f32 1.0, %v996_v14  ;;  %v3127_v62 = vadd.f32 1.0, %v790_v12  ;;  %v3129_v15 = vand.u32 3, %v801_v31 }
 0x1bf   :  { %v1150_v23 = vadd.f32 -0.4999988, %v1149_v37  ;;  %v1358_v10 = vadd.f32 1.0, %v1357_v49  ;;  %v3132_v40 = vmul.f32 %v798_v7, %v3007_v36  ;;  %v1011_v44 = vxor.u32 2147483648, %v1005_v28  ;;  %v1581_v37 = vld [vmem:[#allocation8 + $0x78] sm:$0xff] }
 0x1c0   :  { %v1369_v54 = vand.u32 3, %v1368_v51  ;;  %v1501_v52 = vxor.u32 2147483648, %v1500_v27  ;;  %vm1006_vm3 = vweird.f32 %v2206_v53  ;;  %v1159_v19 = vadd.f32 1.0, %v1158_v48  ;;  %v1597_v49 = vld [vmem:[#allocation8 + $0xf8] sm:$0xff]  ;;  %1598 = vmatpush.msra.mxu0 %v1581_v37 }
 0x1c1   :  { %v1162_v20 = vadd.s32 3, %v1145_v39  ;;  %v1372_v50 = vxor.u32 2147483648, %v1366_v9  ;;  %vm1381_vm12 = vcmp.lt.s32.totalorder %v2801_v11, 0  ;;  %vm3138_vm5 = vcmp.le.f32.partialorder %v1379_v0, 0.7853982  ;;  %1618 = vmatpush.msra.mxu1 %v1597_v49  ;;  %v1579_v39 = vld [vmem:[#allocation8 + $0x68] sm:$0xff] }
 0x1c2   :  { %v1502_v36 = vsel %vm1381_vm12, %v1501_v52, %v1500_v27  ;;  %vm1010_vm15 = vcmp.eq.s32.totalorder %v1008_v6, 0  ;;  %v1014_v38 = vxor.u32 2147483648, %v997_v18  ;;  %vm443_vm0 = vcmp.eq.s32.totalorder %v3050_v4, 0  ;;  %v1595_v27 = vld [vmem:[#allocation8 + $0xe8] sm:$0xff]  ;;  %v1573_v37 = vld [vmem:[#allocation8 + $0x38] sm:$0xff] }
 0x1c3   :  { %v1503_v45 = vsub.s32 4, %v3047_v29  ;;  %v3149_v13 = vsel %vm3138_vm5, %v2801_v11, %v1502_v36  ;;  %v1151_v3 = vmul.f32 %v1150_v23, %v3070_v35  ;;  %v1375_v0 = vxor.u32 2147483648, %v1358_v10  ;;  %v1589_v49 = vld [vmem:[#allocation8 + $0xb8] sm:$0xff] }
 0x1c4   :  { %v1507_v32 = vmul.f32 %v3149_v13, %v3149_v13  ;;  %vm1009_vm2 = vcmp.lt.s32.totalorder %v1008_v6, 2  ;;  %v1012_v61 = vsel %vm1010_vm15, %v997_v18, %v1011_v44  ;;  %vm1371_vm4 = vcmp.eq.s32.totalorder %v1369_v54, 0 }
 0x1c5   :  { %v3155_v42 = vmul.f32 %v1159_v19, %v3055_v22  ;;  %vm1013_vm14 = vcmp.eq.s32.totalorder %v1008_v6, 2  ;;  %vm1370_vm7 = vcmp.lt.s32.totalorder %v1369_v54, 2  ;;  %v1373_v16 = vsel %vm1371_vm4, %v1358_v10, %v1372_v50 }
 0x1c6   :  { %vm446_vm1 = vcmp.eq.s32.totalorder %v3050_v4, 2  ;;  %vm803_vm13 = vcmp.lt.s32.totalorder %v3129_v15, 2  ;;  %v1515_v5 = vmul.f32 -0.00019511016, %v1507_v32  ;;  %v1015_v43 = vsel %vm1013_vm14, %v1014_v38, %v1005_v28  ;;  %v1580_v28 = vld [vmem:[#allocation8 + $0x70] sm:$0xff] }
 0x1c7   :  { %vm1374_vm6 = vcmp.eq.s32.totalorder %v1369_v54, 2  ;;  %v1508_v35 = vmul.f32 -0.001358992, %v1507_v32  ;;  %v1504_v17 = vsel %vm1381_vm12, %v1503_v45, %v3047_v29  ;;  %v1016_v56 = vsel %vm1009_vm2, %v1012_v61, %v1015_v43  ;;  %1599 = vmatpush.msra.mxu0 %v1580_v28  ;;  %v1578_v54 = vld [vmem:[#allocation8 + $0x60] sm:$0xff]  ;;  %v3311_v45 = vld [vmem:[#allocation16_spill] sm:$0xff] }
 0x1c8   :  { %v1152_v46 = vadd.f32 1.0, %v1151_v3  ;;  %v1376_v31 = vsel %vm1374_vm6, %v1375_v0, %v1366_v9  ;;  %vm442_vm9 = vcmp.lt.s32.totalorder %v3050_v4, 2  ;;  %v805_v22 = vxor.u32 2147483648, %v3132_v40  ;;  %v1572_v28 = vld [vmem:[#allocation8 + $0x30] sm:$0xff] }
 0x1c9   :  { %v1516_v41 = vadd.f32 0.008332121, %v1515_v5  ;;  %v1377_v57 = vsel %vm1370_vm7, %v1373_v16, %v1376_v31  ;;  %v1509_v58 = vadd.f32 0.041655596, %v1508_v35  ;;  %v808_v12 = vxor.u32 2147483648, %v3127_v62  ;;  %1600 = vmatpush.msra.mxu0 %v1579_v39  ;;  %v1584_v39 = vld [vmem:[#allocation8 + $0x90] sm:$0xff] }
 0x1ca   :  { %v1163_v33 = vand.u32 3, %v1162_v20  ;;  %v1166_v25 = vxor.u32 2147483648, %v3155_v42  ;;  %vm1367_vm11 = vweird.f32 %v2579_v63  ;;  %v1506_v29 = vsel %vm3138_vm5, 0, %v1504_v17  ;;  %v1596_v63 = vld [vmem:[#allocation8 + $0xf0] sm:$0xff] }
 0x1cb   :  { %v1517_v14 = vmul.f32 %v1516_v41, %v1507_v32  ;;  %v1017_v7 = vsel %vm1006_vm3, nan, %v1016_v56  ;;  %v1510_v55 = vmul.f32 %v1509_v58, %v1507_v32  ;;  %vm804_vm8 = vcmp.eq.s32.totalorder %v3129_v15, 0  ;;  %1619 = vmatpush.msra.mxu1 %v1596_v63  ;;  %1601 = vmatpush.msra.mxu0 %v1578_v54  ;;  %v1577_v58 = vld [vmem:[#allocation8 + $0x58] sm:$0xff]  ;;  %v1570_v63 = vld [vmem:[#allocation8 + $0x20] sm:$0xff] }
 0x1cc   :  { %v812_v51 = vadd.f32 %v3121_v60, %v3057_v30  ;;  %v1169_v24 = vxor.u32 2147483648, %v1152_v46  ;;  %v1378_v21 = vsel %vm1367_vm11, nan, %v1377_v57  ;;  %v445_v53 = vsel %vm443_vm0, %v3059_v8, %v444_v2  ;;  %v1594_v2 = vld [vmem:[#allocation8 + $0xe0] sm:$0xff] }
 0x1cd   :  { %v806_v48 = vsel %vm804_vm8, %v3127_v62, %v805_v22  ;;  %v1518_v9 = vadd.f32 -0.16666654, %v1517_v14  ;;  %v1511_v6 = vadd.f32 -0.4999988, %v1510_v55  ;;  %vm807_vm10 = vcmp.eq.s32.totalorder %v3129_v15, 2  ;;  %1620 = vmatpush.msra.mxu1 %v1595_v27  ;;  %1602 = vmatpush.msra.mxu0 %v1577_v58  ;;  %v1591_v14 = vld [vmem:[#allocation8 + $0xc8] sm:$0xff] }
 0x1ce   :  { %v1523_v30 = vadd.s32 3, %v1506_v29  ;;  %vm1165_vm3 = vcmp.eq.s32.totalorder %v1163_v33, 0  ;;  %v1173_v60 = vadd.f32 %v1017_v7, %v812_v51  ;;  %v809_v18 = vsel %vm807_vm10, %v808_v12, %v3132_v40  ;;  %v1593_v12 = vld [vmem:[#allocation8 + $0xd8] sm:$0xff]  ;;  %v1575_v29 = vld [vmem:[#allocation8 + $0x48] sm:$0xff]  ;;  %v1574_v7 = vld [vmem:[#allocation8 + $0x40] sm:$0xff] }
 0x1cf   :  { %v1519_v23 = vmul.f32 %v1518_v9, %v1507_v32  ;;  %v1167_v10 = vsel %vm1165_vm3, %v1152_v46, %v1166_v25  ;;  %v1512_v44 = vmul.f32 %v1511_v6, %v1507_v32  ;;  %v448_v62 = vsel %vm446_vm1, %v447_v47, %v3064_v59  ;;  %1621 = vmatpush.msra.mxu1 %v1594_v2  ;;  %v1592_v25 = vld [vmem:[#allocation8 + $0xd0] sm:$0xff]  ;;  %v1590_v55 = vld [vmem:[#allocation8 + $0xc0] sm:$0xff]  ;;  %v1585_v9 = vld [vmem:[#allocation8 + $0x98] sm:$0xff] }
 0x1d0   :  { %v810_v52 = vsel %vm803_vm13, %v806_v48, %v809_v18  ;;  %vm1168_vm12 = vcmp.eq.s32.totalorder %v1163_v33, 2  ;;  %v1534_v19 = vadd.f32 %v1378_v21, %v1173_v60  ;;  %vm1164_vm5 = vcmp.lt.s32.totalorder %v1163_v33, 2  ;;  %v1576_v33 = vld [vmem:[#allocation8 + $0x50] sm:$0xff]  ;;  %v1587_v21 = vld [vmem:[#allocation8 + $0xa8] sm:$0xff]  ;;  %v1569_v48 = vld [vmem:[#allocation8 + $0x18] sm:$0xff] }
 0x1d1   :  { %v1520_v20 = vadd.f32 1.0, %v1519_v23  ;;  %v1170_v40 = vsel %vm1168_vm12, %v1169_v24, %v3155_v42  ;;  %v1513_v50 = vadd.f32 1.0, %v1512_v44  ;;  %v449_v8 = vsel %vm442_vm9, %v445_v53, %v448_v62  ;;  %1622 = vmatpush.msra.mxu1 %v1593_v12  ;;  %1603 = vmatpush.msra.mxu0 %v1576_v33  ;;  %v1588_v51 = vld [vmem:[#allocation8 + $0xb0] sm:$0xff]  ;;  %v1571_v24 = vld [vmem:[#allocation8 + $0x28] sm:$0xff]  ;;  %v1586_v53 = vld [vmem:[#allocation8 + $0xa0] sm:$0xff] }
 0x1d2   :  { %vm800_vm15 = vweird.f32 %v3287_v1  ;;  %v1524_v59 = vand.u32 3, %v1523_v30  ;;  %v1171_v47 = vsel %vm1164_vm5, %v1167_v10, %v1170_v40  ;;  %vm439_vm0 = vweird.f32 %v3311_v45  ;;  %v1568_v6 = vld [vmem:[#allocation8 + $0x10] sm:$0xff]  ;;  %v1567_v27 = vld [vmem:[#allocation8 + $0x8] sm:$0xff]  ;;  %v1566_v60 = vld [vmem:[#allocation8] sm:$0xff] }
 0x1d3   :  { %v811_v15 = vsel %vm800_vm15, nan, %v810_v52  ;;  %v1521_v36 = vmul.f32 %v1520_v20, %v3149_v13  ;;  %v1530_v38 = vxor.u32 2147483648, %v1513_v50  ;;  %vm1161_vm2 = vweird.f32 %v2479_v34  ;;  %1623 = vmatpush.msra.mxu1 %v1592_v25  ;;  %1604 = vmatpush.msra.mxu0 %v1575_v29  ;;  %v1583_v30 = vld [vmem:[#allocation8 + $0x88] sm:$0xff]  ;;  %v1582_v18 = vld [vmem:[#allocation8 + $0x80] sm:$0xff] }
 0x1d4   :  { %v1536_v3 = vmul.f32 0.5, %v1534_v19  ;;  %v1540_v0 = vperm.slane %v1538_v26, 0  ;;  %v450_v32 = vsel %vm439_vm0, nan, %v449_v8  ;;  %v1172_v4 = vsel %vm1161_vm2, nan, %v1171_v47 }
 0x1d5   :  { %v1527_v61 = vxor.u32 2147483648, %v1521_v36  ;;  %v813_v42 = vadd.f32 %v811_v15, %v450_v32  ;;  %vm1526_vm4 = vcmp.eq.s32.totalorder %v1524_v59, 0  ;;  %vm1529_vm14 = vcmp.eq.s32.totalorder %v1524_v59, 2  ;;  %1624 = vmatpush.msra.mxu1 %v1591_v14  ;;  %1605 = vmatpush.msra.mxu0 %v1574_v7 }
 0x1d6   :  { %vm1525_vm7 = vcmp.lt.s32.totalorder %v1524_v59, 2  ;;  %v1531_v16 = vsel %vm1529_vm14, %v1530_v38, %v1521_v36  ;;  %vm1522_vm1 = vweird.f32 %v2801_v11  ;;  %v1544_v43 = vsub.f32 %v1536_v3, %v1540_v0 }
 0x1d7   :  { %v1528_v1 = vsel %vm1526_vm4, %v1513_v50, %v1527_v61  ;;  %v1174_v5 = vadd.f32 %v1172_v4, %v813_v42  ;;  %v1541_v56 = vperm.slane %v1538_v26, 1  ;;  %1625 = vmatpush.msra.mxu1 %v1590_v55  ;;  %1606 = vmatpush.msra.mxu0 %v1573_v37 }
 0x1d8   :  { %v1532_v13 = vsel %vm1525_vm7, %v1528_v1, %v1531_v16  ;;  %1706 = vtanh.f32 %v1544_v43 }
 0x1d9   :  { %v1533_v35 = vsel %vm1522_vm1, nan, %v1532_v13  ;;  %1626 = vmatpush.msra.mxu1 %v1589_v49  ;;  %1607 = vmatpush.msra.mxu0 %v1572_v28 }
 0x1da   :  { %v1535_v17 = vadd.f32 %v1533_v35, %v1174_v5 }
 0x1db   :  { %1627 = vmatpush.msra.mxu1 %v1588_v51  ;;  %1608 = vmatpush.msra.mxu0 %v1571_v24 }
 0x1dc   :  { %v1537_v34 = vmul.f32 0.5, %v1535_v17 }
 0x1dd   :  { %1628 = vmatpush.msra.mxu1 %v1587_v21  ;;  %1609 = vmatpush.msra.mxu0 %v1570_v63 }
 0x1de   :  { %v1545_v46 = vsub.f32 %v1537_v34, %v1541_v56  ;;  %v3200_v31 = vpop.eup %1706 }
 0x1df   :  { %v1548_v22 = vmul.f32 %v3200_v31, %v3200_v31  ;;  %1629 = vmatpush.msra.mxu1 %v1586_v53  ;;  %1610 = vmatpush.msra.mxu0 %v1569_v48 }
 0x1e0   :  { %1708 = vtanh.f32 %v1545_v46 }
 0x1e1   :  { %1630 = vmatpush.msra.mxu1 %v1585_v9  ;;  %1611 = vmatpush.msra.mxu0 %v1568_v6 }
 0x1e3   :  { %1631 = vmatpush.msra.mxu1 %v1584_v39  ;;  %1612 = vmatpush.msra.mxu0 %v1567_v27 }
 0x1e5   :  { %1632 = vmatpush.msra.mxu1 %v1583_v30  ;;  %1613 = vmatpush.msra.mxu0 %v1566_v60 }
 0x1e6   :  { %v3204_v41 = vpop.eup %1708 }
 0x1e7   :  { %v1549_v57 = vmul.f32 %v3204_v41, %v3204_v41  ;;  %1633 = vmatpush.msra.mxu1 %v1582_v18 }
 0x1e9   :  { %v1550_v11 = vadd.f32 %v1549_v57, %v1548_v22 }
 0x1eb   :  { %1551 = vadd.xlane.f32.xlu0 %v1550_v11 }
 0x25e   :  { %v1552_v23 = vpop.xlane.xlu0 %1551 }
 0x25f   :  { %v1553_v10 = vmax.f32 %v1552_v23, 1e-16 }
 0x261   :  { %1710 = vrsqrt.f32 %v1553_v10  ;;  %vm1560_vm6 = vweird.f32 %v1553_v10 }
 0x267   :  { %v1711_v44 = vpop.eup %1710 }
 0x268   :  { %v1555_v54 = vmul.f32 %v1711_v44, %v1553_v10  ;;  %vm1561_vm13 = vweird.f32 %v1711_v44 }
 0x269   :  { %vm1562_vm9 = vmor %vm1560_vm6, %vm1561_vm13 }
 0x26a   :  { %v1556_v2 = vmul.f32 %v1711_v44, %v1555_v54 }
 0x26c   :  { %v1557_v62 = vmul.f32 0.5, %v1556_v2 }
 0x26e   :  { %v1558_v52 = vsub.f32 1.5, %v1557_v62 }
 0x270   :  { %v1559_v19 = vmul.f32 %v1711_v44, %v1558_v52 }
 0x272   :  { %v1563_v20 = vsel %vm1562_vm9, %v1711_v44, %v1559_v19 }
 0x273   :  { %v1564_v40 = vmul.f32 %v3200_v31, %v1563_v20  ;;  %v1565_v50 = vmul.f32 %v3204_v41, %v1563_v20 }
 0x275   :  { %1614 = vmatmul.f32.vlgmr.msra.gmra.mxu0 %v1564_v40  ;;  %1634 = vmatmul.f32.vlgmr.msra.gmra.mxu1 %v1565_v50 }
 0x2f2   :  { %v1615_v26 = vpop.f32.mrf.mxu0  ;;  %v1635_v8 = vpop.f32.mrf.mxu1 }
 0x2f3   :  { %v1636_v59 = vadd.f32 %v1635_v8, %v1615_v26 }
 0x2f5   :  { %1638 = vst [vmem:[#allocation10] sm:$0xff] %v1636_v59 }
 0x2f6   :  { %1649 = dma.vmem_to_hbm [thread:$0]  %s1645_s15, 128, %s1647_s18, [#allocation4]  }
 0x2f7   :  { %1838 = dma.done.wait [#allocation4], 128  }
 0x2f8   :  { %1839 = vsyncadd [#allocation4], 4294967168 }
 0x2f9   :  { %1654 = vsyncpa [#allocation3], 1 }
 0x2fa   :  { %1655 = vsyncpa [#allocation6], 1 }
 0x2fb   :  { %1656 = vsyncpa [#allocation9], 1 }
 0x2fc   :  { %1657 = vsyncpa [#allocation4], 1 }

</bundles_post_ra>
